<compile_context>
chip_gen: v6e
topology: v6e:2x2x1
jax: 0.10.0
libtpu: 0.0.40
codegen_flags: <defaults>
</compile_context>

<pallas_src>
import functools

import jax
import jax.numpy as jnp
from jax.experimental import pallas as pl
from jax.experimental.pallas import tpu as pltpu

_LANE = 128  # channels live on the 128-wide lane axis


# --------------------------------------------------------------------------- #
# Kernel
# --------------------------------------------------------------------------- #
def _dwconv_kernel(x_ref, top_ref, bot_ref, w_ref, b_ref, o_ref, *acc_scratch,
                   compute_dtype=jnp.float32):
    # x_ref  : (TH, W, CT)   current H-tile (batch dim squeezed by BlockSpec)
    # top_ref: (1, W, CT)    global row just above this tile (clamped at h==0)
    # bot_ref: (1, W, CT)    global row just below this tile (clamped at last)
    # w_ref  : (3, 3, CT)    per-channel taps
    # b_ref  : (1, 1, CT)    per-channel bias
    # o_ref  : (TH, W, CT)   output tile
    # acc_scratch: optional (TH, W, CT) f32 accumulator (only for non-f32 out)
    acc_ref = acc_scratch[0] if acc_scratch else None
    TH, W, CT = o_ref.shape
    h_id = pl.program_id(1)
    n_h = pl.num_programs(1)

    f32 = jnp.float32
    taps = w_ref[...].astype(compute_dtype)          # (3, 3, CT)
    bias = b_ref[0, 0, :].astype(f32)                # (CT,)

    def shifted(v):
        # v: (R, W, CT). Returns (v[:, w-1], v, v[:, w+1]) with zeroed edge
        # columns.  Column shifts go through pltpu.roll (XLU) instead of
        # sublane-misaligned slices; the wrapped column is killed by a select.
        r = v.shape[0]
        wi = jax.lax.broadcasted_iota(jnp.int32, (r, W, CT), 1)
        vm = jnp.where(wi == 0, 0.0, pltpu.roll(v, 1, 1))        # x[:, w-1]
        vp = jnp.where(wi == W - 1, 0.0, pltpu.roll(v, W - 1, 1))  # x[:, w+1]
        return vm, v, vp

    def tap_row(kh, vm, vc, vp):
        # sum over kw of the W-shifted rows times their taps -> f32 (R, W, CT)
        r = vm * taps[kh, 0] + vc * taps[kh, 1] + vp * taps[kh, 2]
        return r.astype(f32)

    x = x_ref[...].astype(compute_dtype)             # (TH, W, CT)
    xm, xc, xp = shifted(x)

    # f32 outputs accumulate directly in the output block (saves a pass);
    # other dtypes accumulate in the f32 scratch and downcast once at the end.
    tgt = o_ref if acc_ref is None else acc_ref

    # kh == 1 (same-row taps): init accumulator with the bias folded in.
    tgt[...] = tap_row(1, xm, xc, xp) + bias

    # kh == 0 (row above): out[t] += tap_row(0, x[t-1]).
    if TH > 1:
        r0 = tap_row(0, xm, xc, xp)
        tgt[1:, :, :] += r0[:TH - 1]

    @pl.when(h_id > 0)                                # first tile: zero padding
    def _():
        tm, tc, tp = shifted(top_ref[...].astype(compute_dtype))
        tgt[0:1, :, :] += tap_row(0, tm, tc, tp)

    # kh == 2 (row below): out[t] += tap_row(2, x[t+1]).
    if TH > 1:
        r2 = tap_row(2, xm, xc, xp)
        tgt[:TH - 1, :, :] += r2[1:]

    @pl.when(h_id < n_h - 1)                          # last tile: zero padding
    def _():
        bm, bc, bp = shifted(bot_ref[...].astype(compute_dtype))
        tgt[TH - 1:TH, :, :] += tap_row(2, bm, bc, bp)

    if acc_ref is not None:
        o_ref[...] = acc_ref[...].astype(o_ref.dtype)


# --------------------------------------------------------------------------- #
# Tiling / VMEM budgeting helpers
# --------------------------------------------------------------------------- #
def _vmem_capacity_bytes():
    try:
        cap = getattr(pltpu.get_tpu_info(), "vmem_capacity_bytes", None)
        if cap:
            return int(cap)
    except Exception:
        pass
    return 64 << 20  # conservative fallback (v7x-sized)


def _pick_tiles(H, W, c_pad, x_bytes, out_bytes, budget, h_tile, c_tile):
    def per_step(th, ct):
        xblk = th * W * ct * x_bytes
        halo = 2 * W * ct * x_bytes
        oblk = th * W * ct * out_bytes
        prm = 10 * ct * 4
        acc = 0 if out_bytes == 4 else th * W * ct * 4
        tmp = 4 * th * W * ct * 4           # shifted copies / row-sum temporaries
        return 2 * (xblk + halo + oblk + prm) + acc + tmp

    if c_tile is not None:
        ct_cands = [c_tile]
    else:
        ct_cands = [c for c in range(min(c_pad, 512), 0, -_LANE) if c_pad % c == 0]
    if h_tile is not None:
        th_cands = [h_tile]
    else:
        th_cands = [t for t in range(H, 0, -1) if H % t == 0]

    for ct in ct_cands:
        for th in th_cands:
            if per_step(th, ct) <= budget:
                return th, ct
    return th_cands[-1], ct_cands[-1]


# --------------------------------------------------------------------------- #
# Wrappers
# --------------------------------------------------------------------------- #
def dwconv_nhwc(x_nhwc, weight, bias, *, h_tile=None, c_tile=None,
                compute_dtype=jnp.float32):
    """Depthwise 3x3 conv, stride 1, pad 1, bias.  NHWC hot-path entry.

    x_nhwc: (B, H, W, C); weight: (C, 1, 3, 3) PyTorch layout or (3, 3, C)
    pre-transposed; bias: (C,).  Returns (B, H, W, C).
    In a real model keep activations NHWC end-to-end and hoist the weight
    transpose / channel padding out of the per-step path.
    """
    B, H, W, C = x_nhwc.shape
    if weight.ndim == 4:
        assert weight.shape == (C, 1, 3, 3)
        w_hwc = jnp.transpose(weight[:, 0, :, :], (1, 2, 0))
    else:
        assert weight.shape == (3, 3, C)
        w_hwc = weight
    assert bias.shape == (C,)

    # Lane-dense channels: pad C up to a multiple of 128 (no-op for real VAN
    # dims such as 768 = 6*128).
    c_pad = -(-C // _LANE) * _LANE
    if c_pad != C:
        x_nhwc = jnp.pad(x_nhwc, ((0, 0), (0, 0), (0, 0), (0, c_pad - C)))
        w_hwc = jnp.pad(w_hwc, ((0, 0), (0, 0), (0, c_pad - C)))
        bias = jnp.pad(bias, (0, c_pad - C))
    b_11c = bias.reshape(1, 1, c_pad)

    cap = _vmem_capacity_bytes()
    xb = jnp.dtype(x_nhwc.dtype).itemsize
    TH, CT = _pick_tiles(H, W, c_pad, xb, xb, int(cap * 0.7), h_tile, c_tile)
    assert H % TH == 0 and c_pad % CT == 0 and CT % _LANE == 0
    n_h, n_ct = H // TH, c_pad // CT

    out_dtype = x_nhwc.dtype
    scratch = ([] if out_dtype == jnp.float32
               else [pltpu.VMEM((TH, W, CT), jnp.float32)])

    kernel = functools.partial(_dwconv_kernel, compute_dtype=compute_dtype)

    out = pl.pallas_call(
        kernel,
        out_shape=jax.ShapeDtypeStruct((B, H, W, c_pad), out_dtype),
        grid_spec=pltpu.PrefetchScalarGridSpec(
            num_scalar_prefetch=0,
            grid=(B, n_h, n_ct),
            in_specs=[
                # current H-tile of the image
                pl.BlockSpec((None, TH, W, CT), lambda b, h, c: (b, h, 0, c)),
                # 1-row halo above the tile (clamped; unused when h == 0)
                pl.BlockSpec((None, 1, W, CT),
                             lambda b, h, c: (b, jnp.maximum(h * TH - 1, 0), 0, c)),
                # 1-row halo below the tile (clamped; unused when h == n_h-1)
                pl.BlockSpec((None, 1, W, CT),
                             lambda b, h, c: (b, jnp.minimum((h + 1) * TH, H - 1), 0, c)),
                pl.BlockSpec((3, 3, CT), lambda b, h, c: (0, 0, c)),
                pl.BlockSpec((1, 1, CT), lambda b, h, c: (0, 0, c)),
            ],
            out_specs=pl.BlockSpec((None, TH, W, CT), lambda b, h, c: (b, h, 0, c)),
            scratch_shapes=scratch,
        ),
        compiler_params=pltpu.CompilerParams(
            dimension_semantics=("parallel", "parallel", "parallel"),
            vmem_limit_bytes=int(cap * 0.85)),
    )(x_nhwc, x_nhwc, x_nhwc, w_hwc, b_11c)

    if c_pad != C:
        out = out[..., :C]
    return out


def dwconv_pallas(x_nchw, weight, bias, H, W):
    """PyTorch-signature entry (DWConv.forward semantics, NCHW in/out).

    The transposes are layout plumbing only; in an NHWC pipeline call
    dwconv_nhwc directly and keep activations NHWC end-to-end (saves two full
    HBM passes per call — critical on v5e).
    """
    B, C, Hx, Wx = x_nchw.shape
    assert (Hx, Wx) == (H, W)
    y = dwconv_nhwc(jnp.transpose(x_nchw, (0, 2, 3, 1)), weight, bias)
    return jnp.transpose(y, (0, 3, 1, 2))


def _reference_dwconv(x_nchw, weight, bias):
    C = x_nchw.shape[1]
    return jax.lax.conv_general_dilated(
        x_nchw, weight,
        window_strides=(1, 1),
        padding=((1, 1), (1, 1)),
        dimension_numbers=("NCHW", "OIHW", "NCHW"),
        feature_group_count=C,
    ) + bias.reshape(1, C, 1, 1)


# --------------------------------------------------------------------------- #
# Self-test
# --------------------------------------------------------------------------- #
if __name__ == "__main__":
    B, C, H, W = 2, 4, 16, 16
    key = jax.random.PRNGKey(0)
    kx, kw_, kb = jax.random.split(key, 3)

    x = jax.random.normal(kx, (B, C, H, W), dtype=jnp.float32)
    weight = jax.random.normal(kw_, (C, 1, 3, 3), dtype=jnp.float32) * 0.1
    bias = jax.random.normal(kb, (C,), dtype=jnp.float32) * 0.1
    ref = _reference_dwconv(x, weight, bias)

    # 1) PyTorch-signature NCHW path (single H tile).
    out = jax.block_until_ready(dwconv_pallas(x, weight, bias, H, W))
    assert out.shape == (B, C, H, W)
    assert jnp.allclose(out, ref, atol=1e-4, rtol=1e-4), \
        float(jnp.max(jnp.abs(out - ref)))

    # 2) NHWC hot path with forced H tiling (exercises the halo-row logic).
    x_nhwc = jnp.transpose(x, (0, 2, 3, 1))
    out2 = jax.block_until_ready(dwconv_nhwc(x_nhwc, weight, bias, h_tile=4))
    assert jnp.allclose(jnp.transpose(out2, (0, 3, 1, 2)), ref,
                        atol=1e-4, rtol=1e-4)

    # 3) bf16 activations (halved HBM traffic), wider 256-lane channel tile,
    #    H tiling; in-kernel compute stays f32.
    C2 = 256
    x2 = jax.random.normal(kx, (B, H, W, C2), dtype=jnp.float32)
    w2 = jax.random.normal(kw_, (C2, 1, 3, 3), dtype=jnp.float32) * 0.1
    b2 = jax.random.normal(kb, (C2,), dtype=jnp.float32) * 0.1
    x2_bf = x2.astype(jnp.bfloat16)
    ref2 = _reference_dwconv(
        jnp.transpose(x2_bf.astype(jnp.float32), (0, 3, 1, 2)), w2, b2)
    out3 = jax.block_until_ready(dwconv_nhwc(x2_bf, w2, b2, h_tile=8))
    out3_nchw = jnp.transpose(out3.astype(jnp.float32), (0, 3, 1, 2))
    err = float(jnp.max(jnp.abs(out3_nchw - ref2)))
    assert err < 5e-2, err

    print("KERNEL_OK")
</pallas_src>

<mosaic_0001>
module attributes {stable_mosaic.version = 11 : i64} {
  func.func @_dwconv_kernel(%arg0: i32, %arg1: i32, %arg2: i32, %arg3: memref<1x16x16x128xf32, #tpu.memory_space<vmem>>, %arg4: memref<1x1x16x128xf32, #tpu.memory_space<vmem>>, %arg5: memref<1x1x16x128xf32, #tpu.memory_space<vmem>>, %arg6: memref<3x3x128xf32, #tpu.memory_space<vmem>>, %arg7: memref<1x1x128xf32, #tpu.memory_space<vmem>>, %arg8: memref<1x16x16x128xf32, #tpu.memory_space<vmem>>) attributes {dimension_semantics = [#tpu.dimension_semantics<parallel>, #tpu.dimension_semantics<parallel>, #tpu.dimension_semantics<parallel>], iteration_bounds = array<i64: 2, 1, 1>, scalar_prefetch = 0 : i64, scratch_operands = 0 : i64, tpu.core_type = #tpu.core_type<tc>, window_params = [{transform_indices = @transform_0, window_bounds = array<i64: 1, 16, 16, 128>}, {transform_indices = @transform_1, window_bounds = array<i64: 1, 1, 16, 128>}, {transform_indices = @transform_2, window_bounds = array<i64: 1, 1, 16, 128>}, {transform_indices = @transform_3, window_bounds = array<i64: 3, 3, 128>}, {transform_indices = @transform_4, window_bounds = array<i64: 1, 1, 128>}, {transform_indices = @transform_5, window_bounds = array<i64: 1, 16, 16, 128>}]} {
    %c0 = arith.constant 0 : index
    %c0_0 = arith.constant 0 : index
    %c0_1 = arith.constant 0 : index
    %0 = vector.load %arg6[%c0, %c0_0, %c0_1] : memref<3x3x128xf32, #tpu.memory_space<vmem>>, vector<3x3x128xf32>
    %c0_2 = arith.constant 0 : index
    %c0_3 = arith.constant 0 : index
    %c0_4 = arith.constant 0 : index
    %1 = vector.load %arg7[%c0_2, %c0_3, %c0_4] : memref<1x1x128xf32, #tpu.memory_space<vmem>>, vector<1x1x128xf32>
    %2 = vector.shape_cast %1 : vector<1x1x128xf32> to vector<128xf32>
    %c0_5 = arith.constant 0 : index
    %c0_6 = arith.constant 0 : index
    %c0_7 = arith.constant 0 : index
    %c0_8 = arith.constant 0 : index
    %3 = vector.load %arg3[%c0_5, %c0_6, %c0_7, %c0_8] : memref<1x16x16x128xf32, #tpu.memory_space<vmem>>, vector<1x16x16x128xf32>
    %4 = vector.shape_cast %3 : vector<1x16x16x128xf32> to vector<16x16x128xf32>
    %5 = tpu.iota {dimensions = array<i32: 1>} : vector<16x16x128xi32>
    %c0_i32 = arith.constant 0 : i32
    %6 = vector.broadcast %c0_i32 : i32 to vector<16x16x128xi32>
    %7 = arith.cmpi eq, %5, %6 : vector<16x16x128xi32>
    %c1_i32 = arith.constant 1 : i32
    %8 = tpu.dynamic_rotate %4 by %c1_i32 dim 1 : vector<16x16x128xf32>, i32 -> vector<16x16x128xf32>
    %cst = arith.constant 0.000000e+00 : f32
    %9 = vector.broadcast %cst : f32 to vector<16x16x128xf32>
    %10 = arith.select %7, %9, %8 : vector<16x16x128xi1>, vector<16x16x128xf32>
    %c15_i32 = arith.constant 15 : i32
    %11 = vector.broadcast %c15_i32 : i32 to vector<16x16x128xi32>
    %12 = arith.cmpi eq, %5, %11 : vector<16x16x128xi32>
    %c15_i32_9 = arith.constant 15 : i32
    %13 = tpu.dynamic_rotate %4 by %c15_i32_9 dim 1 : vector<16x16x128xf32>, i32 -> vector<16x16x128xf32>
    %cst_10 = arith.constant 0.000000e+00 : f32
    %14 = vector.broadcast %cst_10 : f32 to vector<16x16x128xf32>
    %15 = arith.select %12, %14, %13 : vector<16x16x128xi1>, vector<16x16x128xf32>
    %16 = vector.extract_strided_slice %0 {offsets = [1, 0, 0], sizes = [1, 1, 128], strides = [1, 1, 1]} : vector<3x3x128xf32> to vector<1x1x128xf32>
    %17 = vector.shape_cast %16 : vector<1x1x128xf32> to vector<128xf32>
    %18 = vector.shape_cast %17 : vector<128xf32> to vector<1x1x128xf32>
    %19 = vector.broadcast %18 : vector<1x1x128xf32> to vector<16x16x128xf32>
    %20 = arith.mulf %10, %19 : vector<16x16x128xf32>
    %21 = vector.extract_strided_slice %0 {offsets = [1, 1, 0], sizes = [1, 1, 128], strides = [1, 1, 1]} : vector<3x3x128xf32> to vector<1x1x128xf32>
    %22 = vector.shape_cast %21 : vector<1x1x128xf32> to vector<128xf32>
    %23 = vector.shape_cast %22 : vector<128xf32> to vector<1x1x128xf32>
    %24 = vector.broadcast %23 : vector<1x1x128xf32> to vector<16x16x128xf32>
    %25 = arith.mulf %4, %24 : vector<16x16x128xf32>
    %26 = arith.addf %20, %25 : vector<16x16x128xf32>
    %27 = vector.extract_strided_slice %0 {offsets = [1, 2, 0], sizes = [1, 1, 128], strides = [1, 1, 1]} : vector<3x3x128xf32> to vector<1x1x128xf32>
    %28 = vector.shape_cast %27 : vector<1x1x128xf32> to vector<128xf32>
    %29 = vector.shape_cast %28 : vector<128xf32> to vector<1x1x128xf32>
    %30 = vector.broadcast %29 : vector<1x1x128xf32> to vector<16x16x128xf32>
    %31 = arith.mulf %15, %30 : vector<16x16x128xf32>
    %32 = arith.addf %26, %31 : vector<16x16x128xf32>
    %33 = vector.shape_cast %2 : vector<128xf32> to vector<1x1x128xf32>
    %34 = vector.broadcast %33 : vector<1x1x128xf32> to vector<16x16x128xf32>
    %35 = arith.addf %32, %34 : vector<16x16x128xf32>
    %c0_11 = arith.constant 0 : index
    %c0_12 = arith.constant 0 : index
    %c0_13 = arith.constant 0 : index
    %c0_14 = arith.constant 0 : index
    %36 = vector.load %arg8[%c0_11, %c0_12, %c0_13, %c0_14] : memref<1x16x16x128xf32, #tpu.memory_space<vmem>>, vector<1x16x16x128xf32>
    %37 = vector.shape_cast %36 : vector<1x16x16x128xf32> to vector<16x16x128xf32>
    %38 = vector.shape_cast %35 : vector<16x16x128xf32> to vector<1x16x16x128xf32>
    tpu.vector_store %arg8[%c0_11, %c0_12, %c0_13, %c0_14], %38 {strides = array<i32>} : memref<1x16x16x128xf32, #tpu.memory_space<vmem>>, vector<1x16x16x128xf32>,
    %39 = vector.extract_strided_slice %0 {offsets = [0, 0, 0], sizes = [1, 1, 128], strides = [1, 1, 1]} : vector<3x3x128xf32> to vector<1x1x128xf32>
    %40 = vector.shape_cast %39 : vector<1x1x128xf32> to vector<128xf32>
    %41 = vector.shape_cast %40 : vector<128xf32> to vector<1x1x128xf32>
    %42 = vector.broadcast %41 : vector<1x1x128xf32> to vector<16x16x128xf32>
    %43 = arith.mulf %10, %42 : vector<16x16x128xf32>
    %44 = vector.extract_strided_slice %0 {offsets = [0, 1, 0], sizes = [1, 1, 128], strides = [1, 1, 1]} : vector<3x3x128xf32> to vector<1x1x128xf32>
    %45 = vector.shape_cast %44 : vector<1x1x128xf32> to vector<128xf32>
    %46 = vector.shape_cast %45 : vector<128xf32> to vector<1x1x128xf32>
    %47 = vector.broadcast %46 : vector<1x1x128xf32> to vector<16x16x128xf32>
    %48 = arith.mulf %4, %47 : vector<16x16x128xf32>
    %49 = arith.addf %43, %48 : vector<16x16x128xf32>
    %50 = vector.extract_strided_slice %0 {offsets = [0, 2, 0], sizes = [1, 1, 128], strides = [1, 1, 1]} : vector<3x3x128xf32> to vector<1x1x128xf32>
    %51 = vector.shape_cast %50 : vector<1x1x128xf32> to vector<128xf32>
    %52 = vector.shape_cast %51 : vector<128xf32> to vector<1x1x128xf32>
    %53 = vector.broadcast %52 : vector<1x1x128xf32> to vector<16x16x128xf32>
    %54 = arith.mulf %15, %53 : vector<16x16x128xf32>
    %55 = arith.addf %49, %54 : vector<16x16x128xf32>
    %c0_15 = arith.constant 0 : index
    %c1 = arith.constant 1 : index
    %c0_16 = arith.constant 0 : index
    %c0_17 = arith.constant 0 : index
    %56 = vector.load %arg8[%c0_15, %c1, %c0_16, %c0_17] : memref<1x16x16x128xf32, #tpu.memory_space<vmem>>, vector<1x15x16x128xf32>
    %57 = vector.shape_cast %56 : vector<1x15x16x128xf32> to vector<15x16x128xf32>
    %58 = vector.extract_strided_slice %55 {offsets = [0, 0, 0], sizes = [15, 16, 128], strides = [1, 1, 1]} : vector<16x16x128xf32> to vector<15x16x128xf32>
    %59 = arith.addf %57, %58 : vector<15x16x128xf32>
    %c0_18 = arith.constant 0 : index
    %c1_19 = arith.constant 1 : index
    %c0_20 = arith.constant 0 : index
    %c0_21 = arith.constant 0 : index
    %60 = vector.load %arg8[%c0_18, %c1_19, %c0_20, %c0_21] : memref<1x16x16x128xf32, #tpu.memory_space<vmem>>, vector<1x15x16x128xf32>
    %61 = vector.shape_cast %60 : vector<1x15x16x128xf32> to vector<15x16x128xf32>
    %62 = vector.shape_cast %59 : vector<15x16x128xf32> to vector<1x15x16x128xf32>
    tpu.vector_store %arg8[%c0_18, %c1_19, %c0_20, %c0_21], %62 {strides = array<i32>} : memref<1x16x16x128xf32, #tpu.memory_space<vmem>>, vector<1x15x16x128xf32>,
    %c0_i32_22 = arith.constant 0 : i32
    %63 = arith.cmpi sgt, %arg1, %c0_i32_22 : i32
    %64 = arith.extui %63 : i1 to i32
    %c0_i32_23 = arith.constant 0 : i32
    %65 = arith.cmpi ne, %64, %c0_i32_23 : i32
    scf.if %65 {
      %c0_34 = arith.constant 0 : index
      %c0_35 = arith.constant 0 : index
      %c0_36 = arith.constant 0 : index
      %c0_37 = arith.constant 0 : index
      %93 = vector.load %arg4[%c0_34, %c0_35, %c0_36, %c0_37] : memref<1x1x16x128xf32, #tpu.memory_space<vmem>>, vector<1x1x16x128xf32>
      %94 = vector.shape_cast %93 : vector<1x1x16x128xf32> to vector<1x16x128xf32>
      %95 = tpu.iota {dimensions = array<i32: 1>} : vector<1x16x128xi32>
      %c0_i32_38 = arith.constant 0 : i32
      %96 = vector.broadcast %c0_i32_38 : i32 to vector<1x16x128xi32>
      %97 = arith.cmpi eq, %95, %96 : vector<1x16x128xi32>
      %c1_i32_39 = arith.constant 1 : i32
      %98 = tpu.dynamic_rotate %94 by %c1_i32_39 dim 1 : vector<1x16x128xf32>, i32 -> vector<1x16x128xf32>
      %cst_40 = arith.constant 0.000000e+00 : f32
      %99 = vector.broadcast %cst_40 : f32 to vector<1x16x128xf32>
      %100 = arith.select %97, %99, %98 : vector<1x16x128xi1>, vector<1x16x128xf32>
      %c15_i32_41 = arith.constant 15 : i32
      %101 = vector.broadcast %c15_i32_41 : i32 to vector<1x16x128xi32>
      %102 = arith.cmpi eq, %95, %101 : vector<1x16x128xi32>
      %c15_i32_42 = arith.constant 15 : i32
      %103 = tpu.dynamic_rotate %94 by %c15_i32_42 dim 1 : vector<1x16x128xf32>, i32 -> vector<1x16x128xf32>
      %cst_43 = arith.constant 0.000000e+00 : f32
      %104 = vector.broadcast %cst_43 : f32 to vector<1x16x128xf32>
      %105 = arith.select %102, %104, %103 : vector<1x16x128xi1>, vector<1x16x128xf32>
      %c0_44 = arith.constant 0 : index
      %c0_45 = arith.constant 0 : index
      %c0_46 = arith.constant 0 : index
      %c0_47 = arith.constant 0 : index
      %106 = vector.load %arg8[%c0_44, %c0_45, %c0_46, %c0_47] : memref<1x16x16x128xf32, #tpu.memory_space<vmem>>, vector<1x1x16x128xf32>
      %107 = vector.shape_cast %106 : vector<1x1x16x128xf32> to vector<1x16x128xf32>
      %108 = vector.extract_strided_slice %0 {offsets = [0, 0, 0], sizes = [1, 1, 128], strides = [1, 1, 1]} : vector<3x3x128xf32> to vector<1x1x128xf32>
      %109 = vector.shape_cast %108 : vector<1x1x128xf32> to vector<128xf32>
      %110 = vector.shape_cast %109 : vector<128xf32> to vector<1x1x128xf32>
      %111 = vector.broadcast %110 : vector<1x1x128xf32> to vector<1x16x128xf32>
      %112 = arith.mulf %100, %111 : vector<1x16x128xf32>
      %113 = vector.extract_strided_slice %0 {offsets = [0, 1, 0], sizes = [1, 1, 128], strides = [1, 1, 1]} : vector<3x3x128xf32> to vector<1x1x128xf32>
      %114 = vector.shape_cast %113 : vector<1x1x128xf32> to vector<128xf32>
      %115 = vector.shape_cast %114 : vector<128xf32> to vector<1x1x128xf32>
      %116 = vector.broadcast %115 : vector<1x1x128xf32> to vector<1x16x128xf32>
      %117 = arith.mulf %94, %116 : vector<1x16x128xf32>
      %118 = arith.addf %112, %117 : vector<1x16x128xf32>
      %119 = vector.extract_strided_slice %0 {offsets = [0, 2, 0], sizes = [1, 1, 128], strides = [1, 1, 1]} : vector<3x3x128xf32> to vector<1x1x128xf32>
      %120 = vector.shape_cast %119 : vector<1x1x128xf32> to vector<128xf32>
      %121 = vector.shape_cast %120 : vector<128xf32> to vector<1x1x128xf32>
      %122 = vector.broadcast %121 : vector<1x1x128xf32> to vector<1x16x128xf32>
      %123 = arith.mulf %105, %122 : vector<1x16x128xf32>
      %124 = arith.addf %118, %123 : vector<1x16x128xf32>
      %125 = arith.addf %107, %124 : vector<1x16x128xf32>
      %c0_48 = arith.constant 0 : index
      %c0_49 = arith.constant 0 : index
      %c0_50 = arith.constant 0 : index
      %c0_51 = arith.constant 0 : index
      %126 = vector.load %arg8[%c0_48, %c0_49, %c0_50, %c0_51] : memref<1x16x16x128xf32, #tpu.memory_space<vmem>>, vector<1x1x16x128xf32>
      %127 = vector.shape_cast %126 : vector<1x1x16x128xf32> to vector<1x16x128xf32>
      %128 = vector.shape_cast %125 : vector<1x16x128xf32> to vector<1x1x16x128xf32>
      tpu.vector_store %arg8[%c0_48, %c0_49, %c0_50, %c0_51], %128 {strides = array<i32>} : memref<1x16x16x128xf32, #tpu.memory_space<vmem>>, vector<1x1x16x128xf32>,
    } else {
    }
    %66 = vector.extract_strided_slice %0 {offsets = [2, 0, 0], sizes = [1, 1, 128], strides = [1, 1, 1]} : vector<3x3x128xf32> to vector<1x1x128xf32>
    %67 = vector.shape_cast %66 : vector<1x1x128xf32> to vector<128xf32>
    %68 = vector.shape_cast %67 : vector<128xf32> to vector<1x1x128xf32>
    %69 = vector.broadcast %68 : vector<1x1x128xf32> to vector<16x16x128xf32>
    %70 = arith.mulf %10, %69 : vector<16x16x128xf32>
    %71 = vector.extract_strided_slice %0 {offsets = [2, 1, 0], sizes = [1, 1, 128], strides = [1, 1, 1]} : vector<3x3x128xf32> to vector<1x1x128xf32>
    %72 = vector.shape_cast %71 : vector<1x1x128xf32> to vector<128xf32>
    %73 = vector.shape_cast %72 : vector<128xf32> to vector<1x1x128xf32>
    %74 = vector.broadcast %73 : vector<1x1x128xf32> to vector<16x16x128xf32>
    %75 = arith.mulf %4, %74 : vector<16x16x128xf32>
    %76 = arith.addf %70, %75 : vector<16x16x128xf32>
    %77 = vector.extract_strided_slice %0 {offsets = [2, 2, 0], sizes = [1, 1, 128], strides = [1, 1, 1]} : vector<3x3x128xf32> to vector<1x1x128xf32>
    %78 = vector.shape_cast %77 : vector<1x1x128xf32> to vector<128xf32>
    %79 = vector.shape_cast %78 : vector<128xf32> to vector<1x1x128xf32>
    %80 = vector.broadcast %79 : vector<1x1x128xf32> to vector<16x16x128xf32>
    %81 = arith.mulf %15, %80 : vector<16x16x128xf32>
    %82 = arith.addf %76, %81 : vector<16x16x128xf32>
    %c0_24 = arith.constant 0 : index
    %c0_25 = arith.constant 0 : index
    %c0_26 = arith.constant 0 : index
    %c0_27 = arith.constant 0 : index
    %83 = vector.load %arg8[%c0_24, %c0_25, %c0_26, %c0_27] : memref<1x16x16x128xf32, #tpu.memory_space<vmem>>, vector<1x15x16x128xf32>
    %84 = vector.shape_cast %83 : vector<1x15x16x128xf32> to vector<15x16x128xf32>
    %85 = vector.extract_strided_slice %82 {offsets = [1, 0, 0], sizes = [15, 16, 128], strides = [1, 1, 1]} : vector<16x16x128xf32> to vector<15x16x128xf32>
    %86 = arith.addf %84, %85 : vector<15x16x128xf32>
    %c0_28 = arith.constant 0 : index
    %c0_29 = arith.constant 0 : index
    %c0_30 = arith.constant 0 : index
    %c0_31 = arith.constant 0 : index
    %87 = vector.load %arg8[%c0_28, %c0_29, %c0_30, %c0_31] : memref<1x16x16x128xf32, #tpu.memory_space<vmem>>, vector<1x15x16x128xf32>
    %88 = vector.shape_cast %87 : vector<1x15x16x128xf32> to vector<15x16x128xf32>
    %89 = vector.shape_cast %86 : vector<15x16x128xf32> to vector<1x15x16x128xf32>
    tpu.vector_store %arg8[%c0_28, %c0_29, %c0_30, %c0_31], %89 {strides = array<i32>} : memref<1x16x16x128xf32, #tpu.memory_space<vmem>>, vector<1x15x16x128xf32>,
    %c0_i32_32 = arith.constant 0 : i32
    %90 = arith.cmpi slt, %arg1, %c0_i32_32 : i32
    %91 = arith.extui %90 : i1 to i32
    %c0_i32_33 = arith.constant 0 : i32
    %92 = arith.cmpi ne, %91, %c0_i32_33 : i32
    scf.if %92 {
      %c0_34 = arith.constant 0 : index
      %c0_35 = arith.constant 0 : index
      %c0_36 = arith.constant 0 : index
      %c0_37 = arith.constant 0 : index
      %93 = vector.load %arg5[%c0_34, %c0_35, %c0_36, %c0_37] : memref<1x1x16x128xf32, #tpu.memory_space<vmem>>, vector<1x1x16x128xf32>
      %94 = vector.shape_cast %93 : vector<1x1x16x128xf32> to vector<1x16x128xf32>
      %95 = tpu.iota {dimensions = array<i32: 1>} : vector<1x16x128xi32>
      %c0_i32_38 = arith.constant 0 : i32
      %96 = vector.broadcast %c0_i32_38 : i32 to vector<1x16x128xi32>
      %97 = arith.cmpi eq, %95, %96 : vector<1x16x128xi32>
      %c1_i32_39 = arith.constant 1 : i32
      %98 = tpu.dynamic_rotate %94 by %c1_i32_39 dim 1 : vector<1x16x128xf32>, i32 -> vector<1x16x128xf32>
      %cst_40 = arith.constant 0.000000e+00 : f32
      %99 = vector.broadcast %cst_40 : f32 to vector<1x16x128xf32>
      %100 = arith.select %97, %99, %98 : vector<1x16x128xi1>, vector<1x16x128xf32>
      %c15_i32_41 = arith.constant 15 : i32
      %101 = vector.broadcast %c15_i32_41 : i32 to vector<1x16x128xi32>
      %102 = arith.cmpi eq, %95, %101 : vector<1x16x128xi32>
      %c15_i32_42 = arith.constant 15 : i32
      %103 = tpu.dynamic_rotate %94 by %c15_i32_42 dim 1 : vector<1x16x128xf32>, i32 -> vector<1x16x128xf32>
      %cst_43 = arith.constant 0.000000e+00 : f32
      %104 = vector.broadcast %cst_43 : f32 to vector<1x16x128xf32>
      %105 = arith.select %102, %104, %103 : vector<1x16x128xi1>, vector<1x16x128xf32>
      %c0_44 = arith.constant 0 : index
      %c15 = arith.constant 15 : index
      %c0_45 = arith.constant 0 : index
      %c0_46 = arith.constant 0 : index
      %106 = vector.load %arg8[%c0_44, %c15, %c0_45, %c0_46] : memref<1x16x16x128xf32, #tpu.memory_space<vmem>>, vector<1x1x16x128xf32>
      %107 = vector.shape_cast %106 : vector<1x1x16x128xf32> to vector<1x16x128xf32>
      %108 = vector.extract_strided_slice %0 {offsets = [2, 0, 0], sizes = [1, 1, 128], strides = [1, 1, 1]} : vector<3x3x128xf32> to vector<1x1x128xf32>
      %109 = vector.shape_cast %108 : vector<1x1x128xf32> to vector<128xf32>
      %110 = vector.shape_cast %109 : vector<128xf32> to vector<1x1x128xf32>
      %111 = vector.broadcast %110 : vector<1x1x128xf32> to vector<1x16x128xf32>
      %112 = arith.mulf %100, %111 : vector<1x16x128xf32>
      %113 = vector.extract_strided_slice %0 {offsets = [2, 1, 0], sizes = [1, 1, 128], strides = [1, 1, 1]} : vector<3x3x128xf32> to vector<1x1x128xf32>
      %114 = vector.shape_cast %113 : vector<1x1x128xf32> to vector<128xf32>
      %115 = vector.shape_cast %114 : vector<128xf32> to vector<1x1x128xf32>
      %116 = vector.broadcast %115 : vector<1x1x128xf32> to vector<1x16x128xf32>
      %117 = arith.mulf %94, %116 : vector<1x16x128xf32>
      %118 = arith.addf %112, %117 : vector<1x16x128xf32>
      %119 = vector.extract_strided_slice %0 {offsets = [2, 2, 0], sizes = [1, 1, 128], strides = [1, 1, 1]} : vector<3x3x128xf32> to vector<1x1x128xf32>
      %120 = vector.shape_cast %119 : vector<1x1x128xf32> to vector<128xf32>
      %121 = vector.shape_cast %120 : vector<128xf32> to vector<1x1x128xf32>
      %122 = vector.broadcast %121 : vector<1x1x128xf32> to vector<1x16x128xf32>
      %123 = arith.mulf %105, %122 : vector<1x16x128xf32>
      %124 = arith.addf %118, %123 : vector<1x16x128xf32>
      %125 = arith.addf %107, %124 : vector<1x16x128xf32>
      %c0_47 = arith.constant 0 : index
      %c15_48 = arith.constant 15 : index
      %c0_49 = arith.constant 0 : index
      %c0_50 = arith.constant 0 : index
      %126 = vector.load %arg8[%c0_47, %c15_48, %c0_49, %c0_50] : memref<1x16x16x128xf32, #tpu.memory_space<vmem>>, vector<1x1x16x128xf32>
      %127 = vector.shape_cast %126 : vector<1x1x16x128xf32> to vector<1x16x128xf32>
      %128 = vector.shape_cast %125 : vector<1x16x128xf32> to vector<1x1x16x128xf32>
      tpu.vector_store %arg8[%c0_47, %c15_48, %c0_49, %c0_50], %128 {strides = array<i32>} : memref<1x16x16x128xf32, #tpu.memory_space<vmem>>, vector<1x1x16x128xf32>,
    } else {
    }
    return
  }
  func.func @transform_0(%arg0: i32, %arg1: i32, %arg2: i32) -> (i32, i32, i32, i32) {
    %c0_i32 = arith.constant 0 : i32
    %c0_i32_0 = arith.constant 0 : i32
    return %arg0, %arg1, %c0_i32, %arg2 : i32, i32, i32, i32
  }
  func.func @transform_1(%arg0: i32, %arg1: i32, %arg2: i32) -> (i32, i32, i32, i32) {
    %c16_i32 = arith.constant 16 : i32
    %0 = arith.muli %arg1, %c16_i32 : i32
    %c1_i32 = arith.constant 1 : i32
    %1 = arith.subi %0, %c1_i32 : i32
    %c0_i32 = arith.constant 0 : i32
    %2 = arith.maxsi %1, %c0_i32 : i32
    %c0_i32_0 = arith.constant 0 : i32
    %c0_i32_1 = arith.constant 0 : i32
    return %arg0, %2, %c0_i32_0, %arg2 : i32, i32, i32, i32
  }
  func.func @transform_2(%arg0: i32, %arg1: i32, %arg2: i32) -> (i32, i32, i32, i32) {
    %c1_i32 = arith.constant 1 : i32
    %0 = arith.addi %arg1, %c1_i32 : i32
    %c16_i32 = arith.constant 16 : i32
    %1 = arith.muli %0, %c16_i32 : i32
    %c15_i32 = arith.constant 15 : i32
    %2 = arith.minsi %1, %c15_i32 : i32
    %c0_i32 = arith.constant 0 : i32
    %c0_i32_0 = arith.constant 0 : i32
    return %arg0, %2, %c0_i32, %arg2 : i32, i32, i32, i32
  }
  func.func @transform_3(%arg0: i32, %arg1: i32, %arg2: i32) -> (i32, i32, i32) {
    %c0_i32 = arith.constant 0 : i32
    %c0_i32_0 = arith.constant 0 : i32
    %c0_i32_1 = arith.constant 0 : i32
    return %c0_i32, %c0_i32_0, %arg2 : i32, i32, i32
  }
  func.func @transform_4(%arg0: i32, %arg1: i32, %arg2: i32) -> (i32, i32, i32) {
    %c0_i32 = arith.constant 0 : i32
    %c0_i32_0 = arith.constant 0 : i32
    %c0_i32_1 = arith.constant 0 : i32
    return %c0_i32, %c0_i32_0, %arg2 : i32, i32, i32
  }
  func.func @transform_5(%arg0: i32, %arg1: i32, %arg2: i32) -> (i32, i32, i32, i32) {
    %c0_i32 = arith.constant 0 : i32
    %c0_i32_0 = arith.constant 0 : i32
    return %arg0, %arg1, %c0_i32, %arg2 : i32, i32, i32, i32
  }
}

</mosaic_0001>

<bundles_post_ra>
// kernel: tpu_custom_call.1
= control target key start
LH: loop header
LB: loop body
LE: loop exit
PB: predicated region body
PF: predicated region fallthrough
CT: control target
= control target key end

     0   :  { %s3662_s0 = inlined_call_operand.hbm [shape: f32[2,16,16,128], index: 0, kind: input, shape index: {}]   ;;  %s3663_s1 = inlined_call_operand.hbm [shape: f32[2,16,16,128], index: 1, kind: input, shape index: {}]   ;;  %s3664_s2 = inlined_call_operand.hbm [shape: f32[2,16,16,128], index: 2, kind: input, shape index: {}]   ;;  %s3665_s3 = inlined_call_operand.hbm [shape: f32[3,3,128], index: 3, kind: input, shape index: {}]   ;;  %s3666_s4 = inlined_call_operand.vmem [shape: f32[1,1,128], index: 4, kind: input, shape index: {}]   ;;  %s3667_s5 = inlined_call_operand.hbm [shape: f32[2,16,16,128], index: 5, kind: output, shape index: {}]  }
   0x1   :  { %3795 = sst [smem:[#allocation110_spill]] %s3663_s1 }
   0x2   :  { %10 = vsyncpa [#allocation3], 0 }
   0x3   :  { %12 = vsyncpa [#allocation3 + $0x1], 0 }
   0x4   :  { %13 = vsyncpa [#allocation6], 0 }
   0x5   :  { %15 = vsyncpa [#allocation6 + $0x1], 0 }
   0x6   :  { %16 = vsyncpa [#allocation9], 0 }
   0x7   :  { %17 = vsyncpa [#allocation4], 0 }
   0x8   :  { %19 = vsyncpa [#allocation4 + $0x1], 0  ;;  %s2115_s18 = smov 0   ;;  %s2117_s19 = smov 0  }
   0x9   :  { %s2119_s20 = smov 0   ;;  %s2121_s21 = smov 0  }
   0xa   :  { %s2123_s22 = smov 0   ;;  %s2125_s23 = smov 0  }
   0xb LB: > { %3796 = sst [smem:[#allocation15_spill]] %s2060_s20  ;;  %s44_s24 = sadd.s32 1, %s2068_s22  ;;  %s2072_s23 = sphi %s2125_s23, %s25_s23   ;;  %s2068_s22 = sphi %s2123_s22, %s4079_s22   ;;  %s2064_s21 = sphi %s2121_s21, %s4078_s21   ;;  %s2060_s20 = sphi %s2119_s20, %s4077_s20   ;;  %s2056_s19 = sphi %s2117_s19, %s4081_s19   ;;  %s2052_s18 = sphi %s2115_s18, %s4080_s18  }
   0xc   : > { %3797 = sst [smem:[#allocation16_spill]] %s2068_s22  ;;  %s55_s25 = sadd.s32 1, %s2060_s20 }
   0xd   : > { %p46_p0 = scmp.ge.s32.totalorder %s44_s24, 2  ;;  %p62_p1 = scmp.ne.s32.totalorder %s2060_s20, %s2056_s19 }
   0xe   : > { %p63_p2 = scmp.eq.s32.totalorder %s2072_s23, 0  ;;  %p1801_p5 = scmp.lt.s32.totalorder %s2072_s23, 2 }
   0xf   : > { %s4083_s24 = smov (%p46_p0, %s44_s24), 0  ;;  %s2160_s27 = sand.u32 1, %s2060_s20  }
  0x10   : > { %3798 = sst [smem:[#allocation17_spill]] %s4083_s24  ;;  %p64_p4 = por %p63_p2, %p62_p1 }
  0x11   : > { %s48_s26 = ssub.s32 %s2068_s22, %s4083_s24  ;;  %s2163_s28 = sshll.u32 %s2068_s22, 12 }
  0x12   : > { %p53_p6 = scmp.eq.s32.totalorder %s48_s26, 0  ;;  %p2165_p7 = pnand %p1801_p5, %p64_p4 }
  0x13   : > { %s296_s6 = sand.u32 1, %s2072_s23   ;;  %s1682_s7 = sshll.u32 %s2160_s27, 4 }
  0x14   : > { %s2170_s30 = scalar_select %p53_p6, %s2060_s20, %s55_s25  }
  0x15   : > { %s3801_s1 = sld [smem:[#allocation110_spill]]  ;;  %s300_s11 = scalar_lea.vmem [#allocation5], %s1682_s7 }
  0x16   : > { %3800 = sst [smem:[#allocation18_spill]] %s2170_s30  ;;  %s314_s12 = sshll.u32 %s300_s11, 4  ;;  %s315_s12 = int_to_ptr.vmem [resolvable:$true] %s314_s12 }
  0x17   : > { %s2178_s13 = scalar_lea.sflag [#allocation6], %s296_s6  ;;  %p3674_p8 = pneg %p2165_p7 }
  0x18   : > { %s1887_s14 = scalar_lea.vmem %s315_s12, 256  ;;  %s2074_s15 = smov [#allocation5]  }
  0x19   : > { %p1888_p9 = scmp.ne.s32.totalorder %s315_s12, %s1887_s14  ;;  %s1892_s16 = sshll.u32 %s2074_s15, 4  ;;  %s1893_s16 = int_to_ptr.vmem [resolvable:$false] %s1892_s16 }
  0x1a   : > { %s1894_s17 = scalar_lea.vmem %s1893_s16, 512  ;;  %p1895_p12 = scmp.lt.s32.totalorder %s315_s12, %s1893_s16 }
  0x1b   : > { %s313_s10 = scalar_lea.hbm %s3801_s1, %s2163_s28  ;;  %p1890_p10 = pnand %p1888_p9, %p3674_p8 }
  0x1c   : > { %p1896_p13 = scmp.lt.s32.totalorder %s1894_s17, %s1887_s14 }
  0x1d   : > { %p1891_p11 = pneg %p1890_p10 }
  0x1e   : > { %p1897_p0 = por %p1896_p13, %p1895_p12 }
  0x20   : > { %p1898_p2 = pnand %p1897_p0, %p1891_p11 }
  0x22   : > { %1901 = shalt.err (!%p1898_p2)
}
  0x23   : > { %s3668_s25 = smov 128   ;;  %s3670_s26 = smov 8  }
  0x24   : > { %1792 = dma.hbm_to_vmem [thread:$0]  (!%p2165_p7), %s313_s10, 256, %s315_s12, %s2178_s13, %s3668_s25, %s3668_s25, %s3670_s26  }
  0x25   : > { %s328_s6 = scalar_lea.vmem [#allocation7], %s1682_s7  ;;  %s2194_s9 = sadd.s32 4294967295, %s2072_s23  }
  0x26   : > { %s342_s8 = sshll.u32 %s328_s6, 4  ;;  %s1674_s11 = sadd.s32 4294967294, %s2072_s23   ;;  %s2191_s8 = int_to_ptr.vmem [resolvable:$true] %s342_s8 }
  0x27   : > { %p68_p4 = scmp.ne.s32.totalorder %s2056_s19, %s2052_s18  ;;  %p69_p5 = scmp.eq.s32.totalorder %s2194_s9, 0 }
  0x28   : > { %p224_p6 = scmp.eq.s32.totalorder %s2194_s9, 1  ;;  %p230_p9 = scmp.eq.s32.totalorder %s1674_s11, 1 }
  0x29   : > { %p2203_p10 = por %p69_p5, %p68_p4  ;;  %p1675_p11 = scmp.ge.s32.totalorder %s2072_s23, 1 }
  0x2a   : > { %p2211_p12 = por %p224_p6, %p62_p1  ;;  %p2215_p13 = por %p230_p9, %p68_p4 }
  0x2b   : > { %p237_p0 = scmp.lt.s32.totalorder %s2072_s23, 3  ;;  %s2077_s15 = smov [#allocation8]  }
  0x2c   : > { %s3803_s10 = scalar_select %p2211_p12, 1, 0 }
  0x2d   : > { %s3804_s12 = scalar_select %p2215_p13, 1, 0 }
  0x2e   : > { %p2220_p2 = pnand %p1675_p11, %p237_p0  ;;  %s251_s16 = sshll.u32 %s2077_s15, 4  ;;  %s252_s16 = int_to_ptr.vmem [resolvable:$true] %s251_s16 }
  0x2f   : > { %s1679_s17 = sshll.u32 %s2160_s27, 8  ;;  %s1913_s15 = scalar_lea.vmem %s252_s16, 192 }
  0x30   : > { %p1782_p3 = pneg %p2220_p2  ;;  %s275_s1 = scalar_lea.vmem [#allocation2], %s1679_s17 }
  0x31   : > { %s286_s24 = sshll.u32 %s275_s1, 4  ;;  %p1914_p6 = scmp.ne.s32.totalorder %s252_s16, %s1913_s15  ;;  %s2238_s24 = int_to_ptr.vmem [resolvable:$true] %s286_s24 }
  0x32   : > { %p2233_p1 = pnand %p1782_p3, %p69_p5  ;;  %p1921_p0 = scmp.lt.s32.totalorder %s252_s16, %s252_s16 }
  0x33   : > { %p1922_p8 = scmp.lt.s32.totalorder %s1913_s15, %s1913_s15 }
  0x34   : > { %p1904_p4 = pneg %p2233_p1 }
  0x35   : > { %p1923_p13 = por %p1922_p8, %p1921_p0 }
  0x36   : > { %p1916_p9 = pnand %p1914_p6, %p1904_p4 }
  0x38   : > { %p1917_p11 = pneg %p1916_p9 }
  0x3a   : > { %p1924_p12 = pnand %p1923_p13, %p1917_p11 }
  0x3c   : > { %1927 = shalt.err (!%p1924_p12)
}
  0x3d   : > { %s2078_s6 = smov 64   ;;  %s2079_s1 = smov 4  }
  0x3e   : > { %1785 = dma.hbm_to_vmem [thread:$0]  (!%p2233_p1), %s3665_s3, 192, %s252_s16, [#allocation9], %s2078_s6, %s2078_s6, %s2079_s1  }
  0x3f   : > { %s272_s22 = scalar_lea.sflag [#allocation3], %s2160_s27  ;;  %s1941_s25 = scalar_lea.vmem %s2238_s24, 4096 }
  0x40   : > { %p1942_p3 = scmp.ne.s32.totalorder %s2238_s24, %s1941_s25  ;;  %p3807_p8 = pneg %p2165_p7 }
  0x41   : > { %s2080_s15 = smov [#allocation2]  }
  0x42   : > { %p1944_p13 = pnand %p1942_p3, %p3807_p8  ;;  %s1946_s30 = sshll.u32 %s2080_s15, 4  ;;  %s1947_s30 = int_to_ptr.vmem [resolvable:$false] %s1946_s30 }
  0x43   : > { %s1948_s20 = scalar_lea.vmem %s1947_s30, 8192  ;;  %p1949_p4 = scmp.lt.s32.totalorder %s2238_s24, %s1947_s30 }
  0x44   : > { %p1945_p12 = pneg %p1944_p13  ;;  %p1950_p6 = scmp.lt.s32.totalorder %s1948_s20, %s1941_s25 }
  0x46   : > { %p1951_p9 = por %p1950_p6, %p1949_p4 }
  0x48   : > { %p1952_p11 = pnand %p1951_p9, %p1945_p12 }
  0x4a   : > { %1955 = shalt.err (!%p1952_p11)
}
  0x4b   : > { %s3808_s26 = smov 8   ;;  %s3809_s16 = smov 128  }
  0x4c   : > { %s3810_s1 = scalar_lea.hbm %s3662_s0, %s2163_s28  ;;  %s3811_s20 = sadd.s32 3840, %s2163_s28 }
  0x4d   : > { %1789 = dma.hbm_to_vmem [thread:$0]  (!%p2165_p7), %s3810_s1, 4096, %s2238_s24, %s272_s22, %s3809_s16, %s3809_s16, %s3808_s26  }
  0x4e   : > { %s341_s17 = scalar_lea.hbm %s3664_s2, %s3811_s20  ;;  %s1969_s11 = scalar_lea.vmem %s2191_s8, 256 }
  0x4f   : > { %p1970_p1 = scmp.ne.s32.totalorder %s2191_s8, %s1969_s11  ;;  %p3812_p0 = pmov %p3807_p8 }
  0x50   : > { %s2081_s15 = smov [#allocation7]  }
  0x51   : > { %p1972_p3 = pnand %p1970_p1, %p3812_p0  ;;  %s1974_s27 = sshll.u32 %s2081_s15, 4  ;;  %s1975_s27 = int_to_ptr.vmem [resolvable:$false] %s1974_s27 }
  0x52   : > { %s1976_s6 = scalar_lea.vmem %s1975_s27, 512  ;;  %p1977_p13 = scmp.lt.s32.totalorder %s2191_s8, %s1975_s27 }
  0x53   : > { %p1973_p8 = pneg %p1972_p3  ;;  %p1978_p12 = scmp.lt.s32.totalorder %s1976_s6, %s1969_s11 }
  0x55   : > { %p1979_p4 = por %p1978_p12, %p1977_p13 }
  0x57   : > { %p1980_p6 = pnand %p1979_p4, %p1973_p8 }
  0x59   : > { %1983 = shalt.err (!%p1980_p6)
}
  0x5a   : > { %1795 = dma.hbm_to_vmem [thread:$0]  (!%p2165_p7), %s341_s17, 256, %s2191_s8, %s2178_s13, %s3809_s16, %s3809_s16, %s3808_s26  }
  0x5b   : > { %354 = sbr.rel (%p2220_p2) target bundleno = 308 (0x134), region = 40 }
  0x60   : > { %s2286_s22 = sand.u32 1, %s2056_s19  }
  0x61   : > { %s1689_s24 = sshll.u32 %s2286_s22, 8  ;;  %s357_s28 = scalar_lea.sflag [#allocation3], %s2286_s22 }
  0x62   : > { %s2292_s29 = scalar_lea.vmem [#allocation2], %s1689_s24 }
  0x63   : > { %2035 = dma.done.wait (%p2203_p10), %s357_s28, 4096  }
  0x64   : > { %2037 = vsyncadd (%p2203_p10), %s357_s28, 4294963200  ;;  %s365_s13 = sand.u32 1, %s2194_s9  }
  0x65   : > { %s366_s8 = scalar_lea.sflag [#allocation6], %s365_s13 }
  0x66   : > { %2039 = dma.done.wait (%p2203_p10), %s366_s8, 512  }
  0x67   : > { %2041 = vsyncadd (%p2203_p10), %s366_s8, 4294966784 }
  0x68   : > { %2043 = dma.done.wait (%p69_p5), [#allocation9], 192  }
  0x69   : > { %2045 = vsyncadd (%p69_p5), [#allocation9], 4294967104  ;;  %v471_v0 = vlaneseq  ;;  %v435_v5 = vld [vmem:[#allocation8] sm:$0x7]  ;;  %v436_v6 = vld [vmem:[#allocation8 + $0x4] sm:$0x7] }
  0x6a   : > { %v2318_v7 = vld [vmem:[%s2292_s29 + $0x10] sm:$0xff]  ;;  %v2321_v8 = vld [vmem:[%s2292_s29 + $0x18] sm:$0xff]  ;;  %v2353_v23 = vld [vmem:[%s2292_s29 + $0x20] sm:$0xff]  ;;  %s3386_s14 = scalar_lea.vmem [#allocation10], %s1689_s24  ;;  %s1768_s26 = sshll.u32 %s2064_s21, 12 }
  0x6b   : > { %v2307_v1 = vshrl.u32 %v471_v0, 7  ;;  %v477_v13 = vrot.slane %v2318_v7, 7  ;;  %v493_v14 = vrot.slane %v2321_v8, 7  ;;  %v576_v15 = vrot.slane %v2318_v7, 1  ;;  %v2356_v24 = vld [vmem:[%s2292_s29 + $0x28] sm:$0xff]  ;;  %v2398_v45 = vld [vmem:[%s2292_s29 + $0x30] sm:$0xff]  ;;  %s3609_s30 = scalar_lea.hbm %s3667_s5, %s1768_s26 }
  0x6c   : > { %v592_v16 = vrot.slane %v2321_v8, 1  ;;  %v437_v32 = vld [vmem:[#allocation8 + $0x8] sm:$0x7]  ;;  %v478_v34 = vrot.slane %v2353_v23, 7  ;;  %v494_v35 = vrot.slane %v2356_v24, 7  ;;  %v577_v36 = vrot.slane %v2353_v23, 1 }
  0x6d   : > { %v674_v2 = vsub.s32 0, %v2307_v1  ;;  %v710_v3 = vsub.s32 1, %v2307_v1  ;;  %v2312_v4 = vsub.s32 2, %v2307_v1  ;;  %vm474_vm0 = vcmp.eq.s32.totalorder %v2307_v1, 0  ;;  %v2411_v50 = vld [vmem:[%s2292_s29 + $0x38] sm:$0xff]  ;;  %s1506_s16 = sshll.u32 %s3386_s14, 4  ;;  %s3611_s16 = int_to_ptr.vmem [resolvable:$true] %s1506_s16 }
  0x6e   : > { %vm508_vm1 = vcmp.lt.s32.totalorder %v2307_v1, 1  ;;  %vm607_vm2 = vcmp.lt.s32.totalorder %v2307_v1, 7  ;;  %v2331_v12 = vadd.s32 8, %v2307_v1  ;;  %v593_v40 = vrot.slane %v2356_v24, 1  ;;  %v2416_v51 = vld [vmem:[%s3666_s4] ss:$0 sm:$0xff] }
  0x6f   : > { %v2323_v9 = vrot.slane %v436_v6, %v674_v2  ;;  %v2325_v10 = vrot.slane %v436_v6, %v710_v3  ;;  %v2328_v11 = vrot.slane %v436_v6, %v2312_v4  ;;  %v2339_v18 = vrot.slane %v435_v5, %v674_v2  ;;  %s1489_s21 = scalar_lea.sflag [#allocation4], %s2286_s22  ;;  %s1984_s25 = scalar_lea.vmem %s3611_s16, 4096 }
  0x70   : > { %v526_v19 = vsel %vm508_vm1, %v493_v14, %v477_v13  ;;  %v2345_v20 = vsel %vm607_vm2, %v576_v15, %v592_v16  ;;  %v2347_v21 = vrot.slane %v435_v5, %v710_v3  ;;  %v2350_v22 = vrot.slane %v435_v5, %v2312_v4  ;;  %p1985_p7 = scmp.ne.s32.totalorder %s3611_s16, %s1984_s25  ;;  %p4073_p5 = scmp.ne.s32.totalorder %s3803_s10, 0 }
  0x71   : > { %v714_v17 = vmul.f32 %v2325_v10, %v2318_v7  ;;  %v2360_v25 = vsel %vm474_vm0, 0.0, %v526_v19  ;;  %v782_v26 = vmul.f32 %v2328_v11, %v2345_v20  ;;  %v2366_v27 = vsel %vm508_vm1, %v477_v13, %v493_v14  ;;  %s2082_s17 = smov [#allocation10]  }
  0x72   : > { %vm574_vm3 = vcmp.eq.s32.totalorder %v2331_v12, 15  ;;  %v678_v28 = vmul.f32 %v2323_v9, %v2360_v25  ;;  %v625_v29 = vsel %vm607_vm2, %v592_v16, %v576_v15  ;;  %v679_v30 = vmul.f32 %v2323_v9, %v2366_v27  ;;  %v2453_v16 = vld [vmem:[%s2292_s29 + $0x40] sm:$0xff]  ;;  %p1986_p10 = pnand %p1985_p7, %p4073_p5  ;;  %s1988_s11 = sshll.u32 %s2082_s17, 4  ;;  %s1989_s11 = int_to_ptr.vmem [resolvable:$false] %s1988_s11 }
  0x73   : > { %v715_v31 = vmul.f32 %v2325_v10, %v2321_v8  ;;  %v2379_v33 = vsel %vm574_vm3, 0.0, %v625_v29  ;;  %v527_v41 = vsel %vm508_vm1, %v494_v35, %v478_v34  ;;  %v716_v42 = vmul.f32 %v2325_v10, %v2353_v23  ;;  %s1990_s15 = scalar_lea.vmem %s1989_s11, 8192  ;;  %p1991_p9 = scmp.lt.s32.totalorder %s3611_s16, %s1989_s11 }
  0x74   : > { %v746_v37 = vadd.f32 %v714_v17, %v678_v28  ;;  %v783_v39 = vmul.f32 %v2328_v11, %v2379_v33  ;;  %v2393_v43 = vsel %vm508_vm1, %v478_v34, %v494_v35  ;;  %v717_v44 = vmul.f32 %v2325_v10, %v2356_v24  ;;  %v2456_v17 = vld [vmem:[%s2292_s29 + $0x48] sm:$0xff]  ;;  %p1987_p2 = pneg %p1986_p10  ;;  %p1992_p11 = scmp.lt.s32.totalorder %s1990_s15, %s1984_s25 }
  0x75   : > { %v747_v38 = vadd.f32 %v715_v31, %v679_v30  ;;  %v2400_v47 = vrot.slane %v437_v32, %v674_v2  ;;  %v2404_v48 = vsel %vm474_vm0, 0.0, %v527_v41  ;;  %v2408_v49 = vsel %vm607_vm2, %v577_v36, %v593_v40 }
  0x76   : > { %v814_v46 = vadd.f32 %v782_v26, %v746_v37  ;;  %v680_v52 = vmul.f32 %v2323_v9, %v2404_v48  ;;  %v784_v53 = vmul.f32 %v2328_v11, %v2408_v49  ;;  %v626_v54 = vsel %vm607_vm2, %v593_v40, %v577_v36  ;;  %p1993_p1 = por %p1992_p11, %p1991_p9 }
  0x77   : > { %v681_v55 = vmul.f32 %v2323_v9, %v2393_v43  ;;  %v2426_v56 = vrot.slane %v437_v32, %v710_v3  ;;  %v815_v57 = vadd.f32 %v783_v39, %v747_v38  ;;  %v2430_v58 = vsel %vm574_vm3, 0.0, %v626_v54 }
  0x78   : > { %v479_v59 = vrot.slane %v2398_v45, 7  ;;  %v748_v60 = vadd.f32 %v716_v42, %v680_v52  ;;  %v785_v62 = vmul.f32 %v2328_v11, %v2430_v58  ;;  %v495_v63 = vrot.slane %v2411_v50, 7  ;;  %p1994_p0 = pnand %p1993_p1, %p1987_p2 }
  0x79   : > { %3813 = vst [vmem:[#allocation19_spill] sm:$0xff] %v2426_v56  ;;  %v749_v61 = vadd.f32 %v717_v44, %v681_v55  ;;  %v2437_v0 = vadd.f32 %v2416_v51, %v814_v46  ;;  %v2440_v2 = vrot.slane %v437_v32, %v2312_v4  ;;  %v578_v3 = vrot.slane %v2398_v45, 1 }
  0x7a   : > { %v594_v5 = vrot.slane %v2411_v50, 1  ;;  %v816_v6 = vadd.f32 %v784_v53, %v748_v60  ;;  %v528_v13 = vsel %vm508_vm1, %v495_v63, %v479_v59  ;;  %v718_v14 = vmul.f32 %v2325_v10, %v2398_v45  ;;  %v2501_v53 = vld [vmem:[%s2292_s29 + $0x50] sm:$0xff]  ;;  %v2514_v60 = vld [vmem:[%s2292_s29 + $0x58] sm:$0xff] }
  0x7b   : > { %v2450_v15 = vsel %vm508_vm1, %v479_v59, %v495_v63  ;;  %v2459_v4 = vadd.f32 %v2416_v51, %v815_v57  ;;  %v2463_v19 = vsel %vm474_vm0, 0.0, %v528_v13  ;;  %v817_v29 = vadd.f32 %v785_v62, %v749_v61  ;;  %3814 = vst [vmem:[#allocation20_spill] sm:$0xff] %v2501_v53  ;;  %3815 = vst [vmem:[#allocation21_spill] sm:$0xff] %v2514_v60 }
  0x7c   : > { %v2467_v26 = vsel %vm607_vm2, %v578_v3, %v594_v5  ;;  %v627_v28 = vsel %vm607_vm2, %v594_v5, %v578_v3  ;;  %v682_v30 = vmul.f32 %v2323_v9, %v2463_v19  ;;  %v683_v31 = vmul.f32 %v2323_v9, %v2450_v15 }
  0x7d   : > { %v719_v32 = vmul.f32 %v2325_v10, %v2411_v50  ;;  %v786_v34 = vmul.f32 %v2328_v11, %v2467_v26  ;;  %v2481_v35 = vsel %vm574_vm3, 0.0, %v627_v28  ;;  %v480_v36 = vrot.slane %v2453_v16, 7 }
  0x7e   : > { %v496_v37 = vrot.slane %v2456_v17, 7  ;;  %v2486_v38 = vadd.f32 %v2416_v51, %v816_v6  ;;  %v750_v39 = vadd.f32 %v718_v14, %v682_v30  ;;  %v579_v40 = vrot.slane %v2453_v16, 1 }
  0x7f   : > { %v595_v41 = vrot.slane %v2456_v17, 1  ;;  %v720_v44 = vmul.f32 %v2325_v10, %v2453_v16  ;;  %v721_v52 = vmul.f32 %v2325_v10, %v2456_v17  ;;  %v751_v54 = vadd.f32 %v719_v32, %v683_v31 }
  0x80   : > { %v529_v42 = vsel %vm508_vm1, %v496_v37, %v480_v36  ;;  %v2496_v46 = vsel %vm508_vm1, %v480_v36, %v496_v37  ;;  %v787_v55 = vmul.f32 %v2328_v11, %v2481_v35  ;;  %v818_v61 = vadd.f32 %v786_v34, %v750_v39 }
  0x81   : > { %v2507_v57 = vsel %vm474_vm0, 0.0, %v529_v42  ;;  %v2511_v59 = vsel %vm607_vm2, %v579_v40, %v595_v41  ;;  %v628_v63 = vsel %vm607_vm2, %v595_v41, %v579_v40  ;;  %v685_v3 = vmul.f32 %v2323_v9, %v2496_v46 }
  0x82   : > { %v684_v62 = vmul.f32 %v2323_v9, %v2507_v57  ;;  %v2523_v5 = vadd.f32 %v2416_v51, %v817_v29  ;;  %v788_v6 = vmul.f32 %v2328_v11, %v2511_v59  ;;  %v2529_v13 = vsel %vm574_vm3, 0.0, %v628_v63 }
  0x83   : > { %3816 = vst [vmem:[#allocation22_spill] sm:$0xff] %v2529_v13  ;;  %v481_v14 = vrot.slane %v2501_v53, 7  ;;  %v753_v30 = vadd.f32 %v721_v52, %v685_v3  ;;  %v789_v31 = vmul.f32 %v2328_v11, %v2529_v13  ;;  %v497_v32 = vrot.slane %v2514_v60, 7  ;;  %v2554_v52 = vld [vmem:[%s2292_s29 + $0x68] sm:$0xff] }
  0x84   : > { %v752_v28 = vadd.f32 %v720_v44, %v684_v62  ;;  %v819_v29 = vadd.f32 %v787_v55, %v751_v54  ;;  %v580_v34 = vrot.slane %v2501_v53, 1  ;;  %v596_v36 = vrot.slane %v2514_v60, 1  ;;  %v2551_v44 = vld [vmem:[%s2292_s29 + $0x60] sm:$0xff]  ;;  %3819 = vst [vmem:[#allocation25_spill] sm:$0xff] %v2554_v52 }
  0x85   : > { %v723_v37 = vmul.f32 %v2325_v10, %v2514_v60  ;;  %v2540_v39 = vadd.f32 %v2416_v51, %v818_v61  ;;  %v530_v40 = vsel %vm508_vm1, %v497_v32, %v481_v14  ;;  %v722_v41 = vmul.f32 %v2325_v10, %v2501_v53  ;;  %3818 = vst [vmem:[#allocation24_spill] sm:$0xff] %v2551_v44 }
  0x86   : > { %v2548_v42 = vsel %vm508_vm1, %v481_v14, %v497_v32  ;;  %v2558_v54 = vsel %vm474_vm0, 0.0, %v530_v40  ;;  %v2562_v55 = vsel %vm607_vm2, %v580_v34, %v596_v36  ;;  %v629_v61 = vsel %vm607_vm2, %v596_v36, %v580_v34 }
  0x87   : > { %3817 = vst [vmem:[#allocation23_spill] sm:$0xff] %v2548_v42  ;;  %3820 = vst [vmem:[#allocation26_spill] sm:$0xff] %v2558_v54  ;;  %v687_v62 = vmul.f32 %v2323_v9, %v2548_v42  ;;  %v820_v63 = vadd.f32 %v788_v6, %v752_v28  ;;  %v821_v3 = vadd.f32 %v789_v31, %v753_v30  ;;  %v2574_v40 = vsel %vm574_vm3, 0.0, %v629_v61  ;;  %v2605_v42 = vld [vmem:[%s2292_s29 + $0x78] sm:$0xff] }
  0x88   : > { %3821 = vst [vmem:[#allocation27_spill] sm:$0xff] %v2562_v55  ;;  %v686_v14 = vmul.f32 %v2323_v9, %v2558_v54  ;;  %v790_v32 = vmul.f32 %v2328_v11, %v2562_v55  ;;  %3822 = vst [vmem:[#allocation28_spill] sm:$0xff] %v2574_v40  ;;  %v482_v34 = vrot.slane %v2551_v44, 7  ;;  %v498_v36 = vrot.slane %v2554_v52, 7 }
  0x89   : > { %v755_v56 = vadd.f32 %v723_v37, %v687_v62  ;;  %v791_v6 = vmul.f32 %v2328_v11, %v2574_v40  ;;  %v581_v28 = vrot.slane %v2551_v44, 1  ;;  %v597_v30 = vrot.slane %v2554_v52, 1  ;;  %3828 = vst [vmem:[#allocation34_spill] sm:$0xff] %v2605_v42 }
  0x8a   : > { %v754_v60 = vadd.f32 %v722_v41, %v686_v14  ;;  %v2583_v31 = vadd.f32 %v2416_v51, %v819_v29  ;;  %v531_v61 = vsel %vm508_vm1, %v498_v36, %v482_v34  ;;  %v724_v37 = vmul.f32 %v2325_v10, %v2551_v44  ;;  %v2594_v41 = vld [vmem:[%s2292_s29 + $0x70] sm:$0xff] }
  0x8b   : > { %v2591_v62 = vsel %vm508_vm1, %v482_v34, %v498_v36  ;;  %3825 = vst [vmem:[#allocation31_spill] sm:$0xff] %v2594_v41  ;;  %v823_v40 = vadd.f32 %v791_v6, %v755_v56  ;;  %v2598_v55 = vsel %vm474_vm0, 0.0, %v531_v61  ;;  %v2602_v29 = vsel %vm607_vm2, %v581_v28, %v597_v30 }
  0x8c   : > { %3823 = vst [vmem:[#allocation29_spill] sm:$0xff] %v2583_v31  ;;  %3824 = vst [vmem:[#allocation30_spill] sm:$0xff] %v2591_v62  ;;  %v822_v14 = vadd.f32 %v790_v32, %v754_v60  ;;  %v688_v44 = vmul.f32 %v2323_v9, %v2598_v55  ;;  %v630_v34 = vsel %vm607_vm2, %v597_v30, %v581_v28  ;;  %v483_v61 = vrot.slane %v2594_v41, 7 }
  0x8d   : > { %3826 = vst [vmem:[#allocation32_spill] sm:$0xff] %v2598_v55  ;;  %3827 = vst [vmem:[#allocation33_spill] sm:$0xff] %v2602_v29  ;;  %v689_v60 = vmul.f32 %v2323_v9, %v2591_v62  ;;  %v725_v56 = vmul.f32 %v2325_v10, %v2554_v52  ;;  %v2616_v32 = vadd.f32 %v2416_v51, %v820_v63  ;;  %v499_v63 = vrot.slane %v2605_v42, 7 }
  0x8e   : > { %v2619_v36 = vadd.f32 %v2416_v51, %v821_v3  ;;  %v792_v6 = vmul.f32 %v2328_v11, %v2602_v29  ;;  %v2625_v28 = vadd.f32 %v2416_v51, %v822_v14  ;;  %v2628_v30 = vadd.f32 %v2416_v51, %v823_v40 }
  0x8f   : > { %3829 = vst [vmem:[#allocation35_spill] sm:$0xff] %v2616_v32  ;;  %v756_v52 = vadd.f32 %v724_v37, %v688_v44  ;;  %v2633_v62 = vsel %vm574_vm3, 0.0, %v630_v34  ;;  %v582_v3 = vrot.slane %v2594_v41, 1  ;;  %v727_v29 = vmul.f32 %v2325_v10, %v2605_v42  ;;  %v2648_v37 = vld [vmem:[%s2292_s29 + $0x80] sm:$0xff]  ;;  %v2651_v34 = vld [vmem:[%s2292_s29 + $0x88] sm:$0xff] }
  0x90   : > { %3830 = vst [vmem:[#allocation36_spill] sm:$0xff] %v2619_v36  ;;  %3831 = vst [vmem:[#allocation37_spill] sm:$0xff] %v2625_v28  ;;  %v598_v36 = vrot.slane %v2605_v42, 1  ;;  %v757_v55 = vadd.f32 %v725_v56, %v689_v60  ;;  %v532_v14 = vsel %vm508_vm1, %v499_v63, %v483_v61  ;;  %v726_v44 = vmul.f32 %v2325_v10, %v2594_v41 }
  0x91   : > { %3832 = vst [vmem:[#allocation38_spill] sm:$0xff] %v2628_v30  ;;  %3833 = vst [vmem:[#allocation39_spill] sm:$0xff] %v2633_v62  ;;  %v2645_v40 = vsel %vm508_vm1, %v483_v61, %v499_v63  ;;  %v2655_v30 = vsel %vm474_vm0, 0.0, %v532_v14  ;;  %v824_v61 = vadd.f32 %v792_v6, %v756_v52  ;;  %v793_v63 = vmul.f32 %v2328_v11, %v2633_v62 }
  0x92   : > { %3834 = vst [vmem:[#allocation40_spill] sm:$0xff] %v2645_v40  ;;  %3835 = vst [vmem:[#allocation41_spill] sm:$0xff] %v2648_v37  ;;  %v2659_v60 = vsel %vm607_vm2, %v582_v3, %v598_v36  ;;  %v631_v56 = vsel %vm607_vm2, %v598_v36, %v582_v3  ;;  %v691_v42 = vmul.f32 %v2323_v9, %v2645_v40  ;;  %v484_v36 = vrot.slane %v2648_v37, 7 }
  0x93   : > { %3836 = vst [vmem:[#allocation42_spill] sm:$0xff] %v2651_v34  ;;  %3837 = vst [vmem:[#allocation43_spill] sm:$0xff] %v2655_v30  ;;  %v690_v41 = vmul.f32 %v2323_v9, %v2655_v30  ;;  %v794_v14 = vmul.f32 %v2328_v11, %v2659_v60  ;;  %v2673_v28 = vsel %vm574_vm3, 0.0, %v631_v56  ;;  %v500_v52 = vrot.slane %v2651_v34, 7 }
  0x94   : > { %3838 = vst [vmem:[#allocation44_spill] sm:$0xff] %v2659_v60  ;;  %3839 = vst [vmem:[#allocation45_spill] sm:$0xff] %v2673_v28  ;;  %v759_v32 = vadd.f32 %v727_v29, %v691_v42  ;;  %v795_v3 = vmul.f32 %v2328_v11, %v2673_v28  ;;  %v583_v40 = vrot.slane %v2648_v37, 1  ;;  %v599_v30 = vrot.slane %v2651_v34, 1  ;;  %v2692_v29 = vld [vmem:[%s2292_s29 + $0x90] sm:$0xff] }
  0x95   : > { %v758_v6 = vadd.f32 %v726_v44, %v690_v41  ;;  %v533_v60 = vsel %vm508_vm1, %v500_v52, %v484_v36  ;;  %v728_v56 = vmul.f32 %v2325_v10, %v2648_v37  ;;  %v2687_v42 = vsel %vm508_vm1, %v484_v36, %v500_v52  ;;  %3841 = vst [vmem:[#allocation47_spill] sm:$0xff] %v2692_v29  ;;  %v2703_v37 = vld [vmem:[%s2292_s29 + $0x98] sm:$0xff] }
  0x96   : > { %3840 = vst [vmem:[#allocation46_spill] sm:$0xff] %v2687_v42  ;;  %v729_v41 = vmul.f32 %v2325_v10, %v2651_v34  ;;  %v825_v44 = vadd.f32 %v793_v63, %v757_v55  ;;  %v2696_v62 = vsel %vm474_vm0, 0.0, %v533_v60  ;;  %v2700_v31 = vsel %vm607_vm2, %v583_v40, %v599_v30  ;;  %3844 = vst [vmem:[#allocation50_spill] sm:$0xff] %v2703_v37 }
  0x97   : > { %v826_v28 = vadd.f32 %v794_v14, %v758_v6  ;;  %3842 = vst [vmem:[#allocation48_spill] sm:$0xff] %v2696_v62  ;;  %3843 = vst [vmem:[#allocation49_spill] sm:$0xff] %v2700_v31  ;;  %v692_v36 = vmul.f32 %v2323_v9, %v2696_v62  ;;  %v796_v52 = vmul.f32 %v2328_v11, %v2700_v31  ;;  %v485_v34 = vrot.slane %v2692_v29, 7 }
  0x98   : > { %v632_v55 = vsel %vm607_vm2, %v599_v30, %v583_v40  ;;  %v693_v63 = vmul.f32 %v2323_v9, %v2687_v42  ;;  %v2714_v60 = vadd.f32 %v2416_v51, %v824_v61  ;;  %v827_v14 = vadd.f32 %v795_v3, %v759_v32 }
  0x99   : > { %v2718_v6 = vsel %vm574_vm3, 0.0, %v632_v55  ;;  %v760_v62 = vadd.f32 %v728_v56, %v692_v36  ;;  %v501_v40 = vrot.slane %v2703_v37, 7  ;;  %v2725_v42 = vadd.f32 %v2416_v51, %v825_v44  ;;  %v2741_v44 = vld [vmem:[%s2292_s29 + $0xa0] sm:$0xff] }
  0x9a   : > { %3845 = vst [vmem:[#allocation51_spill] sm:$0xff] %v2714_v60  ;;  %3846 = vst [vmem:[#allocation52_spill] sm:$0xff] %v2718_v6  ;;  %v761_v31 = vadd.f32 %v729_v41, %v693_v63  ;;  %v797_v30 = vmul.f32 %v2328_v11, %v2718_v6  ;;  %v2728_v61 = vadd.f32 %v2416_v51, %v826_v28  ;;  %v584_v32 = vrot.slane %v2692_v29, 1  ;;  %v2744_v63 = vld [vmem:[%s2292_s29 + $0xa8] sm:$0xff] }
  0x9b   : > { %3847 = vst [vmem:[#allocation53_spill] sm:$0xff] %v2725_v42  ;;  %v600_v3 = vrot.slane %v2703_v37, 1  ;;  %v828_v55 = vadd.f32 %v796_v52, %v760_v62  ;;  %v534_v56 = vsel %vm508_vm1, %v501_v40, %v485_v34  ;;  %v730_v41 = vmul.f32 %v2325_v10, %v2692_v29  ;;  %3850 = vst [vmem:[#allocation56_spill] sm:$0xff] %v2741_v44  ;;  %v2802_v42 = vld [vmem:[%s2292_s29 + $0xb8] sm:$0xff] }
  0x9c   : > { %3848 = vst [vmem:[#allocation54_spill] sm:$0xff] %v2728_v61  ;;  %v2738_v36 = vsel %vm508_vm1, %v485_v34, %v501_v40  ;;  %3851 = vst [vmem:[#allocation57_spill] sm:$0xff] %v2744_v63  ;;  %v2747_v28 = vadd.f32 %v2416_v51, %v827_v14  ;;  %v2751_v62 = vsel %vm474_vm0, 0.0, %v534_v56  ;;  %v829_v34 = vadd.f32 %v797_v30, %v761_v31 }
  0x9d   : > { %3849 = vst [vmem:[#allocation55_spill] sm:$0xff] %v2738_v36  ;;  %3853 = vst [vmem:[#allocation59_spill] sm:$0xff] %v2751_v62  ;;  %v2755_v52 = vsel %vm607_vm2, %v584_v32, %v600_v3  ;;  %v633_v29 = vsel %vm607_vm2, %v600_v3, %v584_v32  ;;  %v694_v40 = vmul.f32 %v2323_v9, %v2751_v62  ;;  %v486_v31 = vrot.slane %v2741_v44, 7 }
  0x9e   : > { %3852 = vst [vmem:[#allocation58_spill] sm:$0xff] %v2747_v28  ;;  %3854 = vst [vmem:[#allocation60_spill] sm:$0xff] %v2755_v52  ;;  %v695_v14 = vmul.f32 %v2323_v9, %v2738_v36  ;;  %v731_v28 = vmul.f32 %v2325_v10, %v2703_v37  ;;  %v798_v56 = vmul.f32 %v2328_v11, %v2755_v52  ;;  %v2769_v6 = vsel %vm574_vm3, 0.0, %v633_v29 }
  0x9f   : > { %3855 = vst [vmem:[#allocation61_spill] sm:$0xff] %v2769_v6  ;;  %v502_v30 = vrot.slane %v2744_v63, 7  ;;  %v2774_v32 = vadd.f32 %v2416_v51, %v828_v55  ;;  %v762_v3 = vadd.f32 %v730_v41, %v694_v40  ;;  %v585_v36 = vrot.slane %v2741_v44, 1  ;;  %v2789_v55 = vld [vmem:[%s2292_s29 + $0xb0] sm:$0xff]  ;;  %3861 = vst [vmem:[#allocation67_spill] sm:$0xff] %v2802_v42 }
  0xa0   : > { %v601_v37 = vrot.slane %v2744_v63, 1  ;;  %v732_v29 = vmul.f32 %v2325_v10, %v2741_v44  ;;  %v733_v61 = vmul.f32 %v2325_v10, %v2744_v63  ;;  %3858 = vst [vmem:[#allocation64_spill] sm:$0xff] %v2789_v55  ;;  %v763_v41 = vadd.f32 %v731_v28, %v695_v14 }
  0xa1   : > { %3856 = vst [vmem:[#allocation62_spill] sm:$0xff] %v2774_v32  ;;  %v535_v52 = vsel %vm508_vm1, %v502_v30, %v486_v31  ;;  %v2784_v62 = vsel %vm508_vm1, %v486_v31, %v502_v30  ;;  %v799_v40 = vmul.f32 %v2328_v11, %v2769_v6  ;;  %v830_v31 = vadd.f32 %v798_v56, %v762_v3 }
  0xa2   : > { %3857 = vst [vmem:[#allocation63_spill] sm:$0xff] %v2784_v62  ;;  %v2795_v32 = vsel %vm474_vm0, 0.0, %v535_v52  ;;  %v2799_v44 = vsel %vm607_vm2, %v585_v36, %v601_v37  ;;  %v634_v28 = vsel %vm607_vm2, %v601_v37, %v585_v36  ;;  %v697_v14 = vmul.f32 %v2323_v9, %v2784_v62 }
  0xa3   : > { %3859 = vst [vmem:[#allocation65_spill] sm:$0xff] %v2795_v32  ;;  %3860 = vst [vmem:[#allocation66_spill] sm:$0xff] %v2799_v44  ;;  %v696_v30 = vmul.f32 %v2323_v9, %v2795_v32  ;;  %v2811_v63 = vadd.f32 %v2416_v51, %v829_v34  ;;  %v800_v52 = vmul.f32 %v2328_v11, %v2799_v44  ;;  %v2817_v56 = vsel %vm574_vm3, 0.0, %v634_v28 }
  0xa4   : > { %3863 = vst [vmem:[#allocation69_spill] sm:$0xff] %v2817_v56  ;;  %v487_v3 = vrot.slane %v2789_v55, 7  ;;  %v765_v32 = vadd.f32 %v733_v61, %v697_v14  ;;  %v801_v37 = vmul.f32 %v2328_v11, %v2817_v56  ;;  %v503_v36 = vrot.slane %v2802_v42, 7 }
  0xa5   : > { %3862 = vst [vmem:[#allocation68_spill] sm:$0xff] %v2811_v63  ;;  %v764_v6 = vadd.f32 %v732_v29, %v696_v30  ;;  %v831_v34 = vadd.f32 %v799_v40, %v763_v41  ;;  %v586_v62 = vrot.slane %v2789_v55, 1  ;;  %v602_v63 = vrot.slane %v2802_v42, 1  ;;  %v2839_v41 = vld [vmem:[%s2292_s29 + $0xc0] sm:$0xff]  ;;  %v2842_v40 = vld [vmem:[%s2292_s29 + $0xc8] sm:$0xff] }
  0xa6   : > { %v735_v44 = vmul.f32 %v2325_v10, %v2802_v42  ;;  %v2828_v28 = vadd.f32 %v2416_v51, %v830_v31  ;;  %v536_v29 = vsel %vm508_vm1, %v503_v36, %v487_v3  ;;  %v734_v61 = vmul.f32 %v2325_v10, %v2789_v55  ;;  %3866 = vst [vmem:[#allocation72_spill] sm:$0xff] %v2839_v41 }
  0xa7   : > { %v2836_v30 = vsel %vm508_vm1, %v487_v3, %v503_v36  ;;  %3867 = vst [vmem:[#allocation73_spill] sm:$0xff] %v2842_v40  ;;  %v2846_v14 = vsel %vm474_vm0, 0.0, %v536_v29  ;;  %v2850_v31 = vsel %vm607_vm2, %v586_v62, %v602_v63  ;;  %v635_v42 = vsel %vm607_vm2, %v602_v63, %v586_v62 }
  0xa8   : > { %3864 = vst [vmem:[#allocation70_spill] sm:$0xff] %v2828_v28  ;;  %3865 = vst [vmem:[#allocation71_spill] sm:$0xff] %v2836_v30  ;;  %v699_v55 = vmul.f32 %v2323_v9, %v2836_v30  ;;  %v832_v3 = vadd.f32 %v800_v52, %v764_v6  ;;  %v833_v36 = vadd.f32 %v801_v37, %v765_v32  ;;  %v2862_v28 = vsel %vm574_vm3, 0.0, %v635_v42 }
  0xa9   : > { %3868 = vst [vmem:[#allocation74_spill] sm:$0xff] %v2846_v14  ;;  %3869 = vst [vmem:[#allocation75_spill] sm:$0xff] %v2850_v31  ;;  %v698_v56 = vmul.f32 %v2323_v9, %v2846_v14  ;;  %v802_v29 = vmul.f32 %v2328_v11, %v2850_v31  ;;  %v488_v63 = vrot.slane %v2839_v41, 7  ;;  %v504_v62 = vrot.slane %v2842_v40, 7  ;;  %v2994_v14 = vld [vmem:[%s2292_s29 + $0x8] sm:$0xff] }
  0xaa   : > { %3870 = vst [vmem:[#allocation76_spill] sm:$0xff] %v2862_v28  ;;  %v767_v60 = vadd.f32 %v735_v44, %v699_v55  ;;  %v803_v6 = vmul.f32 %v2328_v11, %v2862_v28  ;;  %v587_v32 = vrot.slane %v2839_v41, 1  ;;  %v603_v52 = vrot.slane %v2842_v40, 1 }
  0xab   : > { %v766_v30 = vadd.f32 %v734_v61, %v698_v56  ;;  %v2871_v37 = vadd.f32 %v2416_v51, %v831_v34  ;;  %v537_v42 = vsel %vm508_vm1, %v504_v62, %v488_v63  ;;  %v736_v44 = vmul.f32 %v2325_v10, %v2839_v41  ;;  %v2882_v56 = vld [vmem:[%s2292_s29 + $0xd0] sm:$0xff] }
  0xac   : > { %v2879_v55 = vsel %vm508_vm1, %v488_v63, %v504_v62  ;;  %3873 = vst [vmem:[#allocation79_spill] sm:$0xff] %v2882_v56  ;;  %v835_v28 = vadd.f32 %v803_v6, %v767_v60  ;;  %v2886_v31 = vsel %vm474_vm0, 0.0, %v537_v42  ;;  %v2890_v34 = vsel %vm607_vm2, %v587_v32, %v603_v52 }
  0xad   : > { %3871 = vst [vmem:[#allocation77_spill] sm:$0xff] %v2871_v37  ;;  %3872 = vst [vmem:[#allocation78_spill] sm:$0xff] %v2879_v55  ;;  %v834_v61 = vadd.f32 %v802_v29, %v766_v30  ;;  %v2893_v37 = vld [vmem:[%s2292_s29 + $0xd8] sm:$0xff]  ;;  %v700_v41 = vmul.f32 %v2323_v9, %v2886_v31  ;;  %v636_v63 = vsel %vm607_vm2, %v603_v52, %v587_v32  ;;  %v489_v42 = vrot.slane %v2882_v56, 7 }
  0xae   : > { %3874 = vst [vmem:[#allocation80_spill] sm:$0xff] %v2886_v31  ;;  %3875 = vst [vmem:[#allocation81_spill] sm:$0xff] %v2890_v34  ;;  %v701_v30 = vmul.f32 %v2323_v9, %v2879_v55  ;;  %v737_v60 = vmul.f32 %v2325_v10, %v2842_v40  ;;  %v2904_v29 = vadd.f32 %v2416_v51, %v832_v3  ;;  %v505_v3 = vrot.slane %v2893_v37, 7 }
  0xaf   : > { %3876 = vst [vmem:[#allocation82_spill] sm:$0xff] %v2893_v37  ;;  %v2907_v62 = vadd.f32 %v2416_v51, %v833_v36  ;;  %v804_v6 = vmul.f32 %v2328_v11, %v2890_v34  ;;  %v2913_v32 = vadd.f32 %v2416_v51, %v834_v61  ;;  %v2916_v52 = vadd.f32 %v2416_v51, %v835_v28 }
  0xb0   : > { %3877 = vst [vmem:[#allocation83_spill] sm:$0xff] %v2904_v29  ;;  %v768_v40 = vadd.f32 %v736_v44, %v700_v41  ;;  %v2921_v55 = vsel %vm574_vm3, 0.0, %v636_v63  ;;  %v588_v36 = vrot.slane %v2882_v56, 1  ;;  %v739_v29 = vmul.f32 %v2325_v10, %v2893_v37  ;;  %v2936_v44 = vld [vmem:[%s2292_s29 + $0xe0] sm:$0xff]  ;;  %v2939_v63 = vld [vmem:[%s2292_s29 + $0xe8] sm:$0xff] }
  0xb1   : > { %3878 = vst [vmem:[#allocation84_spill] sm:$0xff] %v2907_v62  ;;  %3879 = vst [vmem:[#allocation85_spill] sm:$0xff] %v2913_v32  ;;  %v604_v62 = vrot.slane %v2893_v37, 1  ;;  %v769_v34 = vadd.f32 %v737_v60, %v701_v30  ;;  %v538_v61 = vsel %vm508_vm1, %v505_v3, %v489_v42  ;;  %v738_v28 = vmul.f32 %v2325_v10, %v2882_v56 }
  0xb2   : > { %3880 = vst [vmem:[#allocation86_spill] sm:$0xff] %v2916_v52  ;;  %3881 = vst [vmem:[#allocation87_spill] sm:$0xff] %v2921_v55  ;;  %v2933_v41 = vsel %vm508_vm1, %v489_v42, %v505_v3  ;;  %v2943_v52 = vsel %vm474_vm0, 0.0, %v538_v61  ;;  %v836_v42 = vadd.f32 %v804_v6, %v768_v40  ;;  %v805_v3 = vmul.f32 %v2328_v11, %v2921_v55 }
  0xb3   : > { %3882 = vst [vmem:[#allocation88_spill] sm:$0xff] %v2933_v41  ;;  %3883 = vst [vmem:[#allocation89_spill] sm:$0xff] %v2936_v44  ;;  %v2947_v30 = vsel %vm607_vm2, %v588_v36, %v604_v62  ;;  %v637_v60 = vsel %vm607_vm2, %v604_v62, %v588_v36  ;;  %v703_v37 = vmul.f32 %v2323_v9, %v2933_v41  ;;  %v490_v62 = vrot.slane %v2936_v44, 7 }
  0xb4   : > { %3884 = vst [vmem:[#allocation90_spill] sm:$0xff] %v2939_v63  ;;  %3885 = vst [vmem:[#allocation91_spill] sm:$0xff] %v2943_v52  ;;  %v702_v56 = vmul.f32 %v2323_v9, %v2943_v52  ;;  %v806_v61 = vmul.f32 %v2328_v11, %v2947_v30  ;;  %v2961_v32 = vsel %vm574_vm3, 0.0, %v637_v60  ;;  %v506_v40 = vrot.slane %v2939_v63, 7 }
  0xb5   : > { %3886 = vst [vmem:[#allocation92_spill] sm:$0xff] %v2947_v30  ;;  %3887 = vst [vmem:[#allocation93_spill] sm:$0xff] %v2961_v32  ;;  %v771_v31 = vadd.f32 %v739_v29, %v703_v37  ;;  %v807_v36 = vmul.f32 %v2328_v11, %v2961_v32  ;;  %v589_v41 = vrot.slane %v2936_v44, 1  ;;  %v605_v55 = vrot.slane %v2939_v63, 1  ;;  %v2980_v29 = vld [vmem:[%s2292_s29] sm:$0xff] }
  0xb6   : > { %v770_v6 = vadd.f32 %v738_v28, %v702_v56  ;;  %v539_v30 = vsel %vm508_vm1, %v506_v40, %v490_v62  ;;  %v740_v60 = vmul.f32 %v2325_v10, %v2936_v44  ;;  %v2975_v37 = vsel %vm508_vm1, %v490_v62, %v506_v40 }
  0xb7   : > { %3888 = vst [vmem:[#allocation94_spill] sm:$0xff] %v2975_v37  ;;  %v741_v56 = vmul.f32 %v2325_v10, %v2939_v63  ;;  %v2983_v28 = vadd.f32 %v2416_v51, %v836_v42  ;;  %v837_v32 = vadd.f32 %v805_v3, %v769_v34  ;;  %v2987_v52 = vsel %vm474_vm0, 0.0, %v539_v30 }
  0xb8   : > { %3890 = vst [vmem:[#allocation96_spill] sm:$0xff] %v2987_v52  ;;  %v2991_v44 = vsel %vm607_vm2, %v589_v41, %v605_v55  ;;  %v704_v62 = vmul.f32 %v2323_v9, %v2987_v52  ;;  %v638_v42 = vsel %vm607_vm2, %v605_v55, %v589_v41  ;;  %v705_v34 = vmul.f32 %v2323_v9, %v2975_v37 }
  0xb9   : > { %3889 = vst [vmem:[#allocation95_spill] sm:$0xff] %v2983_v28  ;;  %3891 = vst [vmem:[#allocation97_spill] sm:$0xff] %v2991_v44  ;;  %v808_v40 = vmul.f32 %v2328_v11, %v2991_v44  ;;  %v838_v30 = vadd.f32 %v806_v61, %v770_v6  ;;  %v839_v3 = vadd.f32 %v807_v36, %v771_v31  ;;  %v3006_v63 = vsel %vm574_vm3, 0.0, %v638_v42 }
  0xba   : > { %3892 = vst [vmem:[#allocation98_spill] sm:$0xff] %v3006_v63  ;;  %v476_v28 = vrot.slane %v2980_v29, 7  ;;  %v772_v53 = vadd.f32 %v740_v60, %v704_v62  ;;  %v773_v13 = vadd.f32 %v741_v56, %v705_v34  ;;  %v809_v52 = vmul.f32 %v2328_v11, %v3006_v63 }
  0xbb   : > { %v492_v44 = vrot.slane %v2994_v14, 7  ;;  %v575_v55 = vrot.slane %v2980_v29, 1  ;;  %v591_v41 = vrot.slane %v2994_v14, 1  ;;  %v712_v31 = vmul.f32 %v2325_v10, %v2980_v29 }
  0xbc   : > { %v713_v61 = vmul.f32 %v2325_v10, %v2994_v14  ;;  %v840_v6 = vadd.f32 %v808_v40, %v772_v53  ;;  %v841_v36 = vadd.f32 %v809_v52, %v773_v13  ;;  %v3030_v53 = vadd.f32 %v2416_v51, %v837_v32  ;;  %v3041_v40 = vld [vmem:[%s2292_s29 + $0xf8] sm:$0xff] }
  0xbd   : > { %v525_v60 = vsel %vm508_vm1, %v492_v44, %v476_v28  ;;  %v509_v56 = vsel %vm508_vm1, %v476_v28, %v492_v44  ;;  %v608_v42 = vsel %vm607_vm2, %v575_v55, %v591_v41  ;;  %v624_v34 = vsel %vm607_vm2, %v591_v41, %v575_v55  ;;  %v3038_v28 = vld [vmem:[%s2292_s29 + $0xf0] sm:$0xff]  ;;  %3896 = vst [vmem:[#allocation102_spill] sm:$0xff] %v3041_v40 }
  0xbe   : > { %v541_v62 = vsel %vm474_vm0, 0.0, %v525_v60  ;;  %v677_v63 = vmul.f32 %v2323_v9, %v509_v56  ;;  %3893 = vst [vmem:[#allocation99_spill] sm:$0xff] %v3030_v53  ;;  %v3033_v13 = vadd.f32 %v2416_v51, %v838_v30  ;;  %v780_v44 = vmul.f32 %v2328_v11, %v608_v42  ;;  %3895 = vst [vmem:[#allocation101_spill] sm:$0xff] %v3038_v28 }
  0xbf   : > { %v676_v52 = vmul.f32 %v2323_v9, %v541_v62  ;;  %v3044_v60 = vadd.f32 %v2416_v51, %v839_v3  ;;  %v3047_v55 = vadd.f32 %v2416_v51, %v840_v6  ;;  %v641_v32 = vsel %vm574_vm3, 0.0, %v624_v34 }
  0xc0   : > { %3894 = vst [vmem:[#allocation100_spill] sm:$0xff] %v3033_v13  ;;  %v745_v41 = vadd.f32 %v713_v61, %v677_v63  ;;  %v3052_v30 = vadd.f32 %v2416_v51, %v841_v36  ;;  %v918_v37 = vmul.f32 %v2339_v18, %v541_v62  ;;  %v781_v53 = vmul.f32 %v2328_v11, %v641_v32 }
  0xc1   : > { %3897 = vst [vmem:[#allocation103_spill] sm:$0xff] %v3044_v60  ;;  %3898 = vst [vmem:[#allocation104_spill] sm:$0xff] %v3047_v55  ;;  %v744_v13 = vadd.f32 %v712_v31, %v676_v52  ;;  %v491_v54 = vrot.slane %v3038_v28, 7  ;;  %v507_v3 = vrot.slane %v3041_v40, 7  ;;  %v590_v60 = vrot.slane %v3038_v28, 1 }
  0xc2   : > { %3899 = vst [vmem:[#allocation105_spill] sm:$0xff] %v3052_v30  ;;  %v606_v6 = vrot.slane %v3041_v40, 1  ;;  %v1016_v34 = vmul.f32 %v2350_v22, %v608_v42  ;;  %v813_v63 = vadd.f32 %v781_v53, %v745_v41  ;;  %v742_v61 = vmul.f32 %v2325_v10, %v3038_v28 }
  0xc3   : > { %v812_v55 = vadd.f32 %v780_v44, %v744_v13  ;;  %v540_v31 = vsel %vm508_vm1, %v507_v3, %v491_v54  ;;  %v524_v62 = vsel %vm508_vm1, %v491_v54, %v507_v3  ;;  %v919_v13 = vmul.f32 %v2339_v18, %v509_v56 }
  0xc4   : > { %v623_v36 = vsel %vm607_vm2, %v590_v60, %v606_v6  ;;  %v639_v52 = vsel %vm607_vm2, %v606_v6, %v590_v60  ;;  %v1017_v42 = vmul.f32 %v2350_v22, %v641_v32  ;;  %v571_v53 = vsel %vm474_vm0, 0.0, %v540_v31 }
  0xc5   : > { %v743_v44 = vmul.f32 %v2325_v10, %v3041_v40  ;;  %v3078_v41 = vadd.f32 %v2416_v51, %v812_v55  ;;  %v706_v30 = vmul.f32 %v2323_v9, %v571_v53  ;;  %v810_v54 = vmul.f32 %v2328_v11, %v623_v36 }
  0xc6   : > { %v671_v60 = vsel %vm574_vm3, 0.0, %v639_v52  ;;  %v3085_v56 = vadd.f32 %v2416_v51, %v813_v63  ;;  %v3088_v32 = vmul.f32 %v2400_v47, %v571_v53  ;;  %v707_v1 = vmul.f32 %v2323_v9, %v524_v62 }
  0xc7   : > { %v811_v10 = vmul.f32 %v2328_v11, %v671_v60  ;;  %v774_v3 = vadd.f32 %v742_v61, %v706_v30  ;;  %v952_v55 = vmul.f32 %v2347_v21, %v2980_v29  ;;  %v953_v6 = vmul.f32 %v2347_v21, %v2994_v14 }
  0xc8   : > { %3900 = vst [vmem:[#allocation106_spill] sm:$0xff] %v3088_v32  ;;  %v920_v12 = vmul.f32 %v2339_v18, %v2360_v25  ;;  %v775_v31 = vadd.f32 %v743_v44, %v707_v1  ;;  %v954_v63 = vmul.f32 %v2347_v21, %v2318_v7  ;;  %v1018_v52 = vmul.f32 %v2350_v22, %v2345_v20 }
  0xc9   : > { %v921_v9 = vmul.f32 %v2339_v18, %v2366_v27  ;;  %v842_v11 = vadd.f32 %v810_v54, %v774_v3  ;;  %v982_v30 = vadd.f32 %v952_v55, %v918_v37  ;;  %v983_v61 = vadd.f32 %v953_v6, %v919_v13 }
  0xca   : > { %v955_v29 = vmul.f32 %v2347_v21, %v2321_v8  ;;  %v3107_v14 = vmul.f32 %v2440_v2, %v623_v36  ;;  %v843_v53 = vadd.f32 %v811_v10, %v775_v31  ;;  %v984_v44 = vadd.f32 %v954_v63, %v920_v12 }
  0xcb   : > { %v922_v7 = vmul.f32 %v2339_v18, %v2404_v48  ;;  %v3112_v1 = vmul.f32 %v2400_v47, %v524_v62  ;;  %v1046_v32 = vadd.f32 %v1016_v34, %v982_v30  ;;  %v1019_v37 = vmul.f32 %v2350_v22, %v2379_v33 }
  0xcc   : > { %3901 = vst [vmem:[#allocation107_spill] sm:$0xff] %v3107_v14  ;;  %v985_v40 = vadd.f32 %v955_v29, %v921_v9  ;;  %v3117_v13 = vadd.f32 %v2416_v51, %v842_v11  ;;  %v3120_v8 = vmul.f32 %v2440_v2, %v671_v60  ;;  %v956_v36 = vmul.f32 %v2347_v21, %v2353_v23  ;;  %v3924_v14 = vld [vmem:[#allocation43_spill] sm:$0xff] }
  0xcd   : > { %3902 = vst [vmem:[#allocation108_spill] sm:$0xff] %v3112_v1  ;;  %v1020_v54 = vmul.f32 %v2350_v22, %v2408_v49  ;;  %v3127_v62 = vadd.f32 %v2416_v51, %v843_v53  ;;  %v1047_v34 = vadd.f32 %v1017_v42, %v983_v61  ;;  %v1048_v10 = vadd.f32 %v1018_v52, %v984_v44 }
  0xce   : > { %3903 = vst [vmem:[#allocation109_spill] sm:$0xff] %v3120_v8  ;;  %v923_v3 = vmul.f32 %v2339_v18, %v2393_v43  ;;  %v3132_v55 = vadd.f32 %v1046_v32, %v2437_v0  ;;  %v986_v6 = vadd.f32 %v956_v36, %v922_v7  ;;  %v957_v60 = vmul.f32 %v2347_v21, %v2356_v24  ;;  %v3904_v36 = vld [vmem:[#allocation26_spill] sm:$0xff]  ;;  %v3923_v8 = vld [vmem:[#allocation39_spill] sm:$0xff] }
  0xcf   : > { %v1021_v23 = vmul.f32 %v2350_v22, %v2430_v58  ;;  %v1049_v12 = vadd.f32 %v1019_v37, %v985_v40  ;;  %v924_v51 = vmul.f32 %v2339_v18, %v2463_v19  ;;  %v958_v42 = vmul.f32 %v2347_v21, %v2398_v45 }
  0xd0   : > { %v1022_v31 = vmul.f32 %v2350_v22, %v2467_v26  ;;  %v1050_v63 = vadd.f32 %v1020_v54, %v986_v6  ;;  %v987_v0 = vadd.f32 %v957_v60, %v923_v3  ;;  %v925_v32 = vmul.f32 %v2339_v18, %v2450_v15  ;;  %v3905_v6 = vld [vmem:[#allocation22_spill] sm:$0xff] }
  0xd1   : > { %v959_v24 = vmul.f32 %v2347_v21, %v2411_v50  ;;  %v988_v52 = vadd.f32 %v958_v42, %v924_v51  ;;  %v1023_v40 = vmul.f32 %v2350_v22, %v2481_v35  ;;  %v926_v9 = vmul.f32 %v2339_v18, %v2507_v57  ;;  %v3907_v51 = vld [vmem:[#allocation29_spill] sm:$0xff] }
  0xd2   : > { %v960_v45 = vmul.f32 %v2347_v21, %v2453_v16  ;;  %v3155_v11 = vadd.f32 %v1047_v34, %v2459_v4  ;;  %v1051_v30 = vadd.f32 %v1021_v23, %v987_v0  ;;  %v1024_v29 = vmul.f32 %v2350_v22, %v2511_v59  ;;  %v3906_v23 = vld [vmem:[#allocation20_spill] sm:$0xff] }
  0xd3   : > { %v989_v61 = vadd.f32 %v959_v24, %v925_v32  ;;  %v1052_v53 = vadd.f32 %v1022_v31, %v988_v52  ;;  %v927_v44 = vmul.f32 %v2339_v18, %v2496_v46  ;;  %v961_v7 = vmul.f32 %v2347_v21, %v2456_v17  ;;  %v3910_v31 = vld [vmem:[#allocation35_spill] sm:$0xff]  ;;  %v3913_v52 = vld [vmem:[#allocation28_spill] sm:$0xff] }
  0xd4   : > { %v990_v50 = vadd.f32 %v960_v45, %v926_v9  ;;  %v3164_v37 = vadd.f32 %v1048_v10, %v2486_v38  ;;  %v3167_v16 = vadd.f32 %v1049_v12, %v2523_v5  ;;  %v3170_v4 = vadd.f32 %v1050_v63, %v2540_v39  ;;  %v3908_v5 = vld [vmem:[#allocation23_spill] sm:$0xff]  ;;  %v3909_v39 = vld [vmem:[#allocation21_spill] sm:$0xff]  ;;  %v3914_v45 = vld [vmem:[#allocation32_spill] sm:$0xff] }
  0xd5   : > { %v928_v54 = vmul.f32 %v2339_v18, %v3904_v36  ;;  %v1053_v34 = vadd.f32 %v1023_v40, %v989_v61  ;;  %v991_v3 = vadd.f32 %v961_v7, %v927_v44  ;;  %v1025_v60 = vmul.f32 %v2350_v22, %v3905_v6  ;;  %v3912_v32 = vld [vmem:[#allocation27_spill] sm:$0xff]  ;;  %v3915_v61 = vld [vmem:[#allocation24_spill] sm:$0xff] }
  0xd6   : > { %v962_v17 = vmul.f32 %v2347_v21, %v3906_v23  ;;  %v3179_v38 = vadd.f32 %v1051_v30, %v3907_v51  ;;  %v1054_v10 = vadd.f32 %v1024_v29, %v990_v50  ;;  %v929_v12 = vmul.f32 %v2339_v18, %v3908_v5  ;;  %v3916_v50 = vld [vmem:[#allocation33_spill] sm:$0xff]  ;;  %v3917_v7 = vld [vmem:[#allocation36_spill] sm:$0xff]  ;;  %v3919_v23 = vld [vmem:[#allocation30_spill] sm:$0xff] }
  0xd7   : > { %v963_v42 = vmul.f32 %v2347_v21, %v3909_v39  ;;  %v3186_v63 = vadd.f32 %v1052_v53, %v3910_v31  ;;  %v1026_v24 = vmul.f32 %v2350_v22, %v3912_v32  ;;  %v1027_v40 = vmul.f32 %v2350_v22, %v3913_v52  ;;  %v3920_v51 = vld [vmem:[#allocation25_spill] sm:$0xff] }
  0xd8   : > { %v992_v0 = vadd.f32 %v962_v17, %v928_v54  ;;  %v930_v30 = vmul.f32 %v2339_v18, %v3914_v45  ;;  %v964_v29 = vmul.f32 %v2347_v21, %v3915_v61  ;;  %v1028_v44 = vmul.f32 %v2350_v22, %v3916_v50 }
  0xd9   : > { %3911 = vst [vmem:[#allocation26_spill] sm:$0xff] %v3186_v63  ;;  %v993_v9 = vadd.f32 %v963_v42, %v929_v12  ;;  %v3199_v53 = vadd.f32 %v1053_v34, %v3917_v7  ;;  %v1055_v54 = vadd.f32 %v1025_v60, %v991_v3  ;;  %v931_v17 = vmul.f32 %v2339_v18, %v3919_v23  ;;  %v3921_v12 = vld [vmem:[#allocation37_spill] sm:$0xff]  ;;  %v3925_v7 = vld [vmem:[#allocation31_spill] sm:$0xff]  ;;  %v3926_v60 = vld [vmem:[#allocation44_spill] sm:$0xff] }
  0xda   : > { %v965_v39 = vmul.f32 %v2347_v21, %v3920_v51  ;;  %v3206_v42 = vadd.f32 %v1054_v10, %v3921_v12  ;;  %v994_v31 = vadd.f32 %v964_v29, %v930_v30  ;;  %v1029_v61 = vmul.f32 %v2350_v22, %v3923_v8  ;;  %v3927_v23 = vld [vmem:[#allocation40_spill] sm:$0xff]  ;;  %v3928_v30 = vld [vmem:[#allocation34_spill] sm:$0xff]  ;;  %v3967_v8 = vld [vmem:[#allocation71_spill] sm:$0xff] }
  0xdb   : > { %3918 = vst [vmem:[#allocation22_spill] sm:$0xff] %v3199_v53  ;;  %v932_v1 = vmul.f32 %v2339_v18, %v3924_v14  ;;  %v1056_v28 = vadd.f32 %v1026_v24, %v992_v0  ;;  %v966_v3 = vmul.f32 %v2347_v21, %v3925_v7  ;;  %v1030_v53 = vmul.f32 %v2350_v22, %v3926_v60  ;;  %v3929_v12 = vld [vmem:[#allocation38_spill] sm:$0xff]  ;;  %v3931_v0 = vld [vmem:[#allocation45_spill] sm:$0xff] }
  0xdc   : > { %3922 = vst [vmem:[#allocation20_spill] sm:$0xff] %v3206_v42  ;;  %v995_v34 = vadd.f32 %v965_v39, %v931_v17  ;;  %v1057_v63 = vadd.f32 %v1027_v40, %v993_v9  ;;  %v1058_v51 = vadd.f32 %v1028_v44, %v994_v31  ;;  %v933_v10 = vmul.f32 %v2339_v18, %v3927_v23  ;;  %v3932_v17 = vld [vmem:[#allocation48_spill] sm:$0xff]  ;;  %v3933_v40 = vld [vmem:[#allocation41_spill] sm:$0xff]  ;;  %v3935_v23 = vld [vmem:[#allocation51_spill] sm:$0xff] }
  0xdd   : > { %v967_v29 = vmul.f32 %v2347_v21, %v3928_v30  ;;  %v3221_v42 = vadd.f32 %v1055_v54, %v3929_v12  ;;  %v996_v14 = vadd.f32 %v966_v3, %v932_v1  ;;  %v1031_v24 = vmul.f32 %v2350_v22, %v3931_v0  ;;  %v3934_v44 = vld [vmem:[#allocation49_spill] sm:$0xff]  ;;  %v3937_v12 = vld [vmem:[#allocation46_spill] sm:$0xff] }
  0xde   : > { %v934_v39 = vmul.f32 %v2339_v18, %v3932_v17  ;;  %v1059_v7 = vadd.f32 %v1029_v61, %v995_v34  ;;  %v968_v9 = vmul.f32 %v2347_v21, %v3933_v40  ;;  %v1032_v31 = vmul.f32 %v2350_v22, %v3934_v44  ;;  %v3938_v3 = vld [vmem:[#allocation42_spill] sm:$0xff]  ;;  %v3939_v0 = vld [vmem:[#allocation53_spill] sm:$0xff] }
  0xdf   : > { %3930 = vst [vmem:[#allocation29_spill] sm:$0xff] %v3221_v42  ;;  %v997_v60 = vadd.f32 %v967_v29, %v933_v10  ;;  %v3232_v30 = vadd.f32 %v1056_v28, %v3935_v23  ;;  %v1060_v54 = vadd.f32 %v1030_v53, %v996_v14  ;;  %v935_v1 = vmul.f32 %v2339_v18, %v3937_v12  ;;  %v3941_v61 = vld [vmem:[#allocation54_spill] sm:$0xff]  ;;  %v3943_v29 = vld [vmem:[#allocation59_spill] sm:$0xff]  ;;  %v3944_v23 = vld [vmem:[#allocation52_spill] sm:$0xff] }
  0xe0   : > { %v969_v42 = vmul.f32 %v2347_v21, %v3938_v3  ;;  %v3239_v17 = vadd.f32 %v1057_v63, %v3939_v0  ;;  %v3242_v34 = vadd.f32 %v1058_v51, %v3941_v61  ;;  %v998_v10 = vadd.f32 %v968_v9, %v934_v39  ;;  %v3945_v53 = vld [vmem:[#allocation47_spill] sm:$0xff]  ;;  %v3946_v12 = vld [vmem:[#allocation58_spill] sm:$0xff] }
  0xe1   : > { %3936 = vst [vmem:[#allocation23_spill] sm:$0xff] %v3232_v30  ;;  %v936_v44 = vmul.f32 %v2339_v18, %v3943_v29  ;;  %v1061_v40 = vadd.f32 %v1031_v24, %v997_v60  ;;  %v1033_v14 = vmul.f32 %v2350_v22, %v3944_v23  ;;  %v970_v30 = vmul.f32 %v2347_v21, %v3945_v53  ;;  %v3948_v0 = vld [vmem:[#allocation55_spill] sm:$0xff]  ;;  %v3949_v61 = vld [vmem:[#allocation50_spill] sm:$0xff]  ;;  %v3952_v60 = vld [vmem:[#allocation60_spill] sm:$0xff] }
  0xe2   : > { %3940 = vst [vmem:[#allocation21_spill] sm:$0xff] %v3239_v17  ;;  %3942 = vst [vmem:[#allocation35_spill] sm:$0xff] %v3242_v34  ;;  %v999_v28 = vadd.f32 %v969_v42, %v935_v1  ;;  %v3251_v3 = vadd.f32 %v1059_v7, %v3946_v12  ;;  %v1062_v63 = vadd.f32 %v1032_v31, %v998_v10  ;;  %v3950_v9 = vld [vmem:[#allocation62_spill] sm:$0xff]  ;;  %v3953_v1 = vld [vmem:[#allocation65_spill] sm:$0xff] }
  0xe3   : > { %v937_v51 = vmul.f32 %v2339_v18, %v3948_v0  ;;  %v971_v39 = vmul.f32 %v2347_v21, %v3949_v61  ;;  %v3258_v34 = vadd.f32 %v1060_v54, %v3950_v9  ;;  %v1000_v42 = vadd.f32 %v970_v30, %v936_v44  ;;  %v3954_v7 = vld [vmem:[#allocation61_spill] sm:$0xff]  ;;  %v3955_v12 = vld [vmem:[#allocation56_spill] sm:$0xff]  ;;  %v3959_v30 = vld [vmem:[#allocation63_spill] sm:$0xff] }
  0xe4   : > { %3947 = vst [vmem:[#allocation27_spill] sm:$0xff] %v3251_v3  ;;  %v1034_v24 = vmul.f32 %v2350_v22, %v3952_v60  ;;  %v938_v17 = vmul.f32 %v2339_v18, %v3953_v1  ;;  %v1035_v31 = vmul.f32 %v2350_v22, %v3954_v7  ;;  %v972_v10 = vmul.f32 %v2347_v21, %v3955_v12  ;;  %v3956_v3 = vld [vmem:[#allocation66_spill] sm:$0xff]  ;;  %v3957_v0 = vld [vmem:[#allocation68_spill] sm:$0xff]  ;;  %v3963_v60 = vld [vmem:[#allocation69_spill] sm:$0xff] }
  0xe5   : > { %3951 = vst [vmem:[#allocation28_spill] sm:$0xff] %v3258_v34  ;;  %v1001_v53 = vadd.f32 %v971_v39, %v937_v51  ;;  %v1036_v61 = vmul.f32 %v2350_v22, %v3956_v3  ;;  %v3271_v54 = vadd.f32 %v1061_v40, %v3957_v0  ;;  %v1063_v44 = vadd.f32 %v1033_v14, %v999_v28  ;;  %v3960_v34 = vld [vmem:[#allocation57_spill] sm:$0xff]  ;;  %v3961_v51 = vld [vmem:[#allocation70_spill] sm:$0xff]  ;;  %v3965_v0 = vld [vmem:[#allocation64_spill] sm:$0xff] }
  0xe6   : > { %v939_v9 = vmul.f32 %v2339_v18, %v3959_v30  ;;  %v973_v1 = vmul.f32 %v2347_v21, %v3960_v34  ;;  %v3278_v39 = vadd.f32 %v1062_v63, %v3961_v51  ;;  %v1002_v7 = vadd.f32 %v972_v10, %v938_v17  ;;  %v3964_v29 = vld [vmem:[#allocation74_spill] sm:$0xff]  ;;  %v3966_v14 = vld [vmem:[#allocation75_spill] sm:$0xff]  ;;  %v3969_v51 = vld [vmem:[#allocation77_spill] sm:$0xff] }
  0xe7   : > { %3958 = vst [vmem:[#allocation32_spill] sm:$0xff] %v3271_v54  ;;  %v1037_v12 = vmul.f32 %v2350_v22, %v3963_v60  ;;  %v940_v3 = vmul.f32 %v2339_v18, %v3964_v29  ;;  %v1064_v23 = vadd.f32 %v1034_v24, %v1000_v42  ;;  %v974_v28 = vmul.f32 %v2347_v21, %v3965_v0  ;;  %v3968_v17 = vld [vmem:[#allocation67_spill] sm:$0xff]  ;;  %v3971_v42 = vld [vmem:[#allocation76_spill] sm:$0xff] }
  0xe8   : > { %3962 = vst [vmem:[#allocation24_spill] sm:$0xff] %v3278_v39  ;;  %v1003_v40 = vadd.f32 %v973_v1, %v939_v9  ;;  %v1038_v54 = vmul.f32 %v2350_v22, %v3966_v14  ;;  %v1065_v30 = vadd.f32 %v1035_v31, %v1001_v53  ;;  %v1066_v34 = vadd.f32 %v1036_v61, %v1002_v7  ;;  %v3972_v1 = vld [vmem:[#allocation80_spill] sm:$0xff]  ;;  %v3974_v7 = vld [vmem:[#allocation81_spill] sm:$0xff] }
  0xe9   : > { %v941_v63 = vmul.f32 %v2339_v18, %v3967_v8  ;;  %v975_v10 = vmul.f32 %v2347_v21, %v3968_v17  ;;  %v3293_v39 = vadd.f32 %v1063_v44, %v3969_v51  ;;  %v1004_v29 = vadd.f32 %v974_v28, %v940_v3  ;;  %v3973_v53 = vld [vmem:[#allocation72_spill] sm:$0xff]  ;;  %v3975_v8 = vld [vmem:[#allocation83_spill] sm:$0xff]  ;;  %v3977_v51 = vld [vmem:[#allocation78_spill] sm:$0xff] }
  0xea   : > { %v1039_v24 = vmul.f32 %v2350_v22, %v3971_v42  ;;  %v942_v9 = vmul.f32 %v2339_v18, %v3972_v1  ;;  %v1067_v0 = vadd.f32 %v1037_v12, %v1003_v40  ;;  %v976_v61 = vmul.f32 %v2347_v21, %v3973_v53  ;;  %v3978_v28 = vld [vmem:[#allocation73_spill] sm:$0xff]  ;;  %v3979_v42 = vld [vmem:[#allocation84_spill] sm:$0xff] }
  0xeb   : > { %3970 = vst [vmem:[#allocation33_spill] sm:$0xff] %v3293_v39  ;;  %v1005_v14 = vadd.f32 %v975_v10, %v941_v63  ;;  %v1040_v31 = vmul.f32 %v2350_v22, %v3974_v7  ;;  %v3304_v17 = vadd.f32 %v1064_v23, %v3975_v8  ;;  %v1068_v44 = vadd.f32 %v1038_v54, %v1004_v29  ;;  %v3981_v12 = vld [vmem:[#allocation85_spill] sm:$0xff]  ;;  %v3983_v10 = vld [vmem:[#allocation91_spill] sm:$0xff] }
  0xec   : > { %v943_v3 = vmul.f32 %v2339_v18, %v3977_v51  ;;  %v977_v39 = vmul.f32 %v2347_v21, %v3978_v28  ;;  %v3311_v1 = vadd.f32 %v1065_v30, %v3979_v42  ;;  %v3314_v40 = vadd.f32 %v1066_v34, %v3981_v12  ;;  %v3984_v23 = vld [vmem:[#allocation87_spill] sm:$0xff]  ;;  %v3986_v51 = vld [vmem:[#allocation86_spill] sm:$0xff]  ;;  %v3988_v42 = vld [vmem:[#allocation88_spill] sm:$0xff] }
  0xed   : > { %3976 = vst [vmem:[#allocation36_spill] sm:$0xff] %v3304_v17  ;;  %v1006_v63 = vadd.f32 %v976_v61, %v942_v9  ;;  %v944_v7 = vmul.f32 %v2339_v18, %v3983_v10  ;;  %v1069_v53 = vadd.f32 %v1039_v24, %v1005_v14  ;;  %v1041_v29 = vmul.f32 %v2350_v22, %v3984_v23  ;;  %v3985_v54 = vld [vmem:[#allocation79_spill] sm:$0xff]  ;;  %v3989_v12 = vld [vmem:[#allocation82_spill] sm:$0xff]  ;;  %v3992_v14 = vld [vmem:[#allocation92_spill] sm:$0xff] }
  0xee   : > { %3980 = vst [vmem:[#allocation25_spill] sm:$0xff] %v3311_v1  ;;  %3982 = vst [vmem:[#allocation37_spill] sm:$0xff] %v3314_v40  ;;  %v1007_v8 = vadd.f32 %v977_v39, %v943_v3  ;;  %v978_v17 = vmul.f32 %v2347_v21, %v3985_v54  ;;  %v3323_v28 = vadd.f32 %v1067_v0, %v3986_v51  ;;  %v3990_v61 = vld [vmem:[#allocation95_spill] sm:$0xff]  ;;  %v3993_v3 = vld [vmem:[#allocation96_spill] sm:$0xff] }
  0xef   : > { %v1070_v30 = vadd.f32 %v1040_v31, %v1006_v63  ;;  %v945_v34 = vmul.f32 %v2339_v18, %v3988_v42  ;;  %v979_v9 = vmul.f32 %v2347_v21, %v3989_v12  ;;  %v3330_v40 = vadd.f32 %v1068_v44, %v3990_v61  ;;  %v3994_v51 = vld [vmem:[#allocation93_spill] sm:$0xff]  ;;  %v3997_v44 = vld [vmem:[#allocation99_spill] sm:$0xff] }
  0xf0   : > { %3987 = vst [vmem:[#allocation31_spill] sm:$0xff] %v3323_v28  ;;  %v1008_v39 = vadd.f32 %v978_v17, %v944_v7  ;;  %v1042_v24 = vmul.f32 %v2350_v22, %v3992_v14  ;;  %v946_v1 = vmul.f32 %v2339_v18, %v3993_v3  ;;  %v1043_v31 = vmul.f32 %v2350_v22, %v3994_v51  ;;  %v3995_v63 = vld [vmem:[#allocation89_spill] sm:$0xff]  ;;  %v4000_v7 = vld [vmem:[#allocation94_spill] sm:$0xff] }
  0xf1   : > { %3991 = vst [vmem:[#allocation34_spill] sm:$0xff] %v3330_v40  ;;  %v1009_v0 = vadd.f32 %v979_v9, %v945_v34  ;;  %v980_v28 = vmul.f32 %v2347_v21, %v3995_v63  ;;  %v3996_v42 = vld [vmem:[#allocation97_spill] sm:$0xff]  ;;  %v3343_v61 = vadd.f32 %v1069_v53, %v3997_v44  ;;  %v3345_v17 = vadd.f32 %v1041_v29, %v1007_v8  ;;  %v4001_v3 = vld [vmem:[#allocation90_spill] sm:$0xff]  ;;  %v4002_v9 = vld [vmem:[#allocation100_spill] sm:$0xff] }
  0xf2   : > { %v1044_v12 = vmul.f32 %v2350_v22, %v3996_v42  ;;  %v947_v40 = vmul.f32 %v2339_v18, %v4000_v7  ;;  %v981_v34 = vmul.f32 %v2347_v21, %v4001_v3  ;;  %v3352_v51 = vadd.f32 %v1070_v30, %v4002_v9  ;;  %v4003_v63 = vld [vmem:[#allocation98_spill] sm:$0xff]  ;;  %v1859_v29 = vld [vmem:[%s2292_s29 + $0x10] sm:$0xff] }
  0xf3   : > { %3998 = vst [vmem:[#allocation38_spill] sm:$0xff] %v3343_v61  ;;  %3999 = vst [vmem:[#allocation51_spill] sm:$0xff] %v3345_v17  ;;  %v1010_v14 = vadd.f32 %v980_v28, %v946_v1  ;;  %v1045_v54 = vmul.f32 %v2350_v22, %v4003_v63  ;;  %v1205_v53 = vmul.f32 %v2400_v47, %v2360_v25  ;;  %v4004_v61 = vld [vmem:[#allocation19_spill] sm:$0xff]  ;;  %v1860_v1 = vld [vmem:[%s2292_s29 + $0x18] sm:$0xff] }
  0xf4   : > { %v3358_v44 = vadd.f32 %v1042_v24, %v1008_v39  ;;  %v1011_v8 = vadd.f32 %v981_v34, %v947_v40  ;;  %v1239_v18 = vmul.f32 %v1859_v29, %v4004_v61  ;;  %v1303_v21 = vmul.f32 %v2440_v2, %v2345_v20 }
  0xf5   : > { %v3364_v17 = vadd.f32 %v1043_v31, %v1009_v0  ;;  %v1074_v30 = vadd.f32 %v1044_v12, %v1010_v14  ;;  %v1206_v22 = vmul.f32 %v2400_v47, %v2366_v27  ;;  %v1240_v25 = vmul.f32 %v1860_v1, %v4004_v61  ;;  %v1861_v12 = vld [vmem:[%s2292_s29 + $0x20] sm:$0xff] }
  0xf6   : > { %v1075_v28 = vadd.f32 %v1045_v54, %v1011_v8  ;;  %v1269_v39 = vadd.f32 %v1239_v18, %v1205_v53  ;;  %v1304_v40 = vmul.f32 %v2440_v2, %v2379_v33  ;;  %v1207_v24 = vmul.f32 %v2400_v47, %v2404_v48  ;;  %v1862_v33 = vld [vmem:[%s2292_s29 + $0x28] sm:$0xff]  ;;  %v1863_v8 = vld [vmem:[%s2292_s29 + $0x30] sm:$0xff] }
  0xf7   : > { %v1135_v20 = vadd.f32 %v1074_v30, %v3117_v13  ;;  %v1270_v0 = vadd.f32 %v1240_v25, %v1206_v22  ;;  %v1241_v14 = vmul.f32 %v1861_v12, %v4004_v61  ;;  %v1305_v27 = vmul.f32 %v2440_v2, %v2408_v49  ;;  %v1864_v22 = vld [vmem:[%s2292_s29 + $0x38] sm:$0xff] }
  0xf8   : > { %v1136_v31 = vadd.f32 %v1075_v28, %v3127_v62  ;;  %v1333_v54 = vadd.f32 %v1303_v21, %v1269_v39  ;;  %v1208_v34 = vmul.f32 %v2400_v47, %v2393_v43  ;;  %v1242_v9 = vmul.f32 %v1862_v33, %v4004_v61 }
  0xf9   : > { %1753 = vst [vmem:[%s3386_s14 + $0xf0] sm:$0xff] %v1135_v20  ;;  %v1334_v48 = vadd.f32 %v1304_v40, %v1270_v0  ;;  %v1271_v13 = vadd.f32 %v1241_v14, %v1207_v24  ;;  %v1306_v49 = vmul.f32 %v2440_v2, %v2430_v58  ;;  %v1209_v62 = vmul.f32 %v2400_v47, %v2463_v19  ;;  %v1866_v0 = vld [vmem:[%s2292_s29 + $0x48] sm:$0xff] }
  0xfa   : > { %1754 = vst [vmem:[%s3386_s14 + $0xf8] sm:$0xff] %v1136_v31  ;;  %v1393_v43 = vadd.f32 %v1333_v54, %v3078_v41  ;;  %v1272_v53 = vadd.f32 %v1242_v9, %v1208_v34  ;;  %v1243_v29 = vmul.f32 %v1863_v8, %v4004_v61  ;;  %v1307_v18 = vmul.f32 %v2440_v2, %v2467_v26  ;;  %v1868_v9 = vld [vmem:[%s2292_s29 + $0x58] sm:$0xff] }
  0xfb   : > { %v1394_v21 = vadd.f32 %v1334_v48, %v3085_v56  ;;  %v1335_v30 = vadd.f32 %v1305_v27, %v1271_v13  ;;  %v1210_v58 = vmul.f32 %v2400_v47, %v2450_v15  ;;  %v1244_v19 = vmul.f32 %v1864_v22, %v4004_v61  ;;  %v1865_v15 = vld [vmem:[%s2292_s29 + $0x40] sm:$0xff]  ;;  %v4007_v22 = vld [vmem:[#allocation43_spill] sm:$0xff] }
  0xfc   : > { %1423 = vst [vmem:[%s3386_s14] sm:$0xff] %v1393_v43  ;;  %v1336_v41 = vadd.f32 %v1306_v49, %v1272_v53  ;;  %v1273_v1 = vadd.f32 %v1243_v29, %v1209_v62  ;;  %v1308_v25 = vmul.f32 %v2440_v2, %v2481_v35  ;;  %v1211_v26 = vmul.f32 %v2400_v47, %v2507_v57  ;;  %v4005_v29 = vld [vmem:[#allocation30_spill] sm:$0xff] }
  0xfd   : > { %1424 = vst [vmem:[%s3386_s14 + $0x8] sm:$0xff] %v1394_v21  ;;  %v1395_v56 = vadd.f32 %v1335_v30, %v3132_v55  ;;  %v1274_v28 = vadd.f32 %v1244_v19, %v1210_v58  ;;  %v1245_v39 = vmul.f32 %v1865_v15, %v4004_v61  ;;  %v1309_v40 = vmul.f32 %v2440_v2, %v2511_v59  ;;  %v4006_v30 = vld [vmem:[#allocation39_spill] sm:$0xff] }
  0xfe   : > { %v1396_v24 = vadd.f32 %v1336_v41, %v3155_v11  ;;  %v1337_v20 = vadd.f32 %v1307_v18, %v1273_v1  ;;  %v1212_v35 = vmul.f32 %v2400_v47, %v2496_v46  ;;  %v1246_v57 = vmul.f32 %v1866_v0, %v4004_v61  ;;  %v1867_v46 = vld [vmem:[%s2292_s29 + $0x50] sm:$0xff]  ;;  %v1870_v18 = vld [vmem:[%s2292_s29 + $0x68] sm:$0xff] }
  0xff   : > { %1425 = vst [vmem:[%s3386_s14 + $0x10] sm:$0xff] %v1395_v56  ;;  %v1338_v55 = vadd.f32 %v1308_v25, %v1274_v28  ;;  %v1275_v12 = vadd.f32 %v1245_v39, %v1211_v26  ;;  %v1310_v14 = vmul.f32 %v2440_v2, %v3905_v6  ;;  %v1213_v59 = vmul.f32 %v2400_v47, %v3904_v36  ;;  %v1871_v1 = vld [vmem:[%s2292_s29 + $0x70] sm:$0xff]  ;;  %v4010_v28 = vld [vmem:[#allocation22_spill] sm:$0xff] }
 0x100   : > { %1426 = vst [vmem:[%s3386_s14 + $0x18] sm:$0xff] %v1396_v24  ;;  %v1397_v11 = vadd.f32 %v1337_v20, %v3164_v37  ;;  %v1276_v27 = vadd.f32 %v1246_v57, %v1212_v35  ;;  %v1247_v31 = vmul.f32 %v1867_v46, %v4004_v61  ;;  %v1311_v54 = vmul.f32 %v2440_v2, %v3912_v32  ;;  %v4009_v26 = vld [vmem:[#allocation44_spill] sm:$0xff] }
 0x101   : > { %v1398_v34 = vadd.f32 %v1338_v55, %v3167_v16  ;;  %v1339_v33 = vadd.f32 %v1309_v40, %v1275_v12  ;;  %v1214_v6 = vmul.f32 %v2400_v47, %v3908_v5  ;;  %v1248_v36 = vmul.f32 %v1868_v9, %v4004_v61  ;;  %v1869_v5 = vld [vmem:[%s2292_s29 + $0x60] sm:$0xff]  ;;  %v4011_v40 = vld [vmem:[#allocation40_spill] sm:$0xff] }
 0x102   : > { %1427 = vst [vmem:[%s3386_s14 + $0x20] sm:$0xff] %v1397_v11  ;;  %v1340_v37 = vadd.f32 %v1310_v14, %v1276_v27  ;;  %v1277_v48 = vadd.f32 %v1247_v31, %v1213_v59  ;;  %v1312_v13 = vmul.f32 %v2440_v2, %v3913_v52  ;;  %v1215_v32 = vmul.f32 %v2400_v47, %v3914_v45  ;;  %v1872_v20 = vld [vmem:[%s2292_s29 + $0x78] sm:$0xff] }
 0x103   : > { %1428 = vst [vmem:[%s3386_s14 + $0x28] sm:$0xff] %v1398_v34  ;;  %v1399_v16 = vadd.f32 %v1339_v33, %v3170_v4  ;;  %v1278_v49 = vadd.f32 %v1248_v36, %v1214_v6  ;;  %v1249_v62 = vmul.f32 %v1869_v5, %v4004_v61  ;;  %v1313_v43 = vmul.f32 %v2440_v2, %v3916_v50  ;;  %v4012_v55 = vld [vmem:[#allocation45_spill] sm:$0xff]  ;;  %v4013_v14 = vld [vmem:[#allocation48_spill] sm:$0xff] }
 0x104   : > { %v1400_v53 = vadd.f32 %v1340_v37, %v3179_v38  ;;  %v1341_v8 = vadd.f32 %v1311_v54, %v1277_v48  ;;  %v1216_v52 = vmul.f32 %v2400_v47, %v4005_v29  ;;  %v1250_v45 = vmul.f32 %v1870_v18, %v4004_v61  ;;  %v4008_v38 = vld [vmem:[#allocation26_spill] sm:$0xff]  ;;  %v4014_v11 = vld [vmem:[#allocation20_spill] sm:$0xff]  ;;  %v4015_v31 = vld [vmem:[#allocation41_spill] sm:$0xff] }
 0x105   : > { %1429 = vst [vmem:[%s3386_s14 + $0x30] sm:$0xff] %v1399_v16  ;;  %v1342_v4 = vadd.f32 %v1312_v13, %v1278_v49  ;;  %v1279_v21 = vadd.f32 %v1249_v62, %v1215_v32  ;;  %v1314_v58 = vmul.f32 %v2440_v2, %v4006_v30  ;;  %v1217_v50 = vmul.f32 %v2400_v47, %v4007_v22  ;;  %v4016_v34 = vld [vmem:[#allocation49_spill] sm:$0xff]  ;;  %v4018_v37 = vld [vmem:[#allocation46_spill] sm:$0xff]  ;;  %v4019_v5 = vld [vmem:[#allocation52_spill] sm:$0xff] }
 0x106   : > { %1430 = vst [vmem:[%s3386_s14 + $0x38] sm:$0xff] %v1400_v53  ;;  %v1401_v19 = vadd.f32 %v1341_v8, %v4008_v38  ;;  %v1280_v41 = vadd.f32 %v1250_v45, %v1216_v52  ;;  %v1251_v25 = vmul.f32 %v1871_v1, %v4004_v61  ;;  %v1315_v56 = vmul.f32 %v2440_v2, %v4009_v26  ;;  %v4017_v6 = vld [vmem:[#allocation29_spill] sm:$0xff]  ;;  %v1873_v13 = vld [vmem:[%s2292_s29 + $0x88] sm:$0xff] }
 0x107   : > { %v1402_v15 = vadd.f32 %v1342_v4, %v4010_v28  ;;  %v1343_v39 = vadd.f32 %v1313_v43, %v1279_v21  ;;  %v1218_v24 = vmul.f32 %v2400_v47, %v4011_v40  ;;  %v1252_v35 = vmul.f32 %v1872_v20, %v4004_v61  ;;  %v4020_v43 = vld [vmem:[#allocation59_spill] sm:$0xff]  ;;  %v4023_v4 = vld [vmem:[#allocation60_spill] sm:$0xff]  ;;  %v4024_v30 = vld [vmem:[#allocation21_spill] sm:$0xff] }
 0x108   : > { %1431 = vst [vmem:[%s3386_s14 + $0x40] sm:$0xff] %v1401_v19  ;;  %v1344_v0 = vadd.f32 %v1314_v58, %v1280_v41  ;;  %v1281_v57 = vadd.f32 %v1251_v25, %v1217_v50  ;;  %v1316_v12 = vmul.f32 %v2440_v2, %v4012_v55  ;;  %v1219_v59 = vmul.f32 %v2400_v47, %v4013_v14  ;;  %v4021_v8 = vld [vmem:[#allocation23_spill] sm:$0xff]  ;;  %v4026_v19 = vld [vmem:[#allocation50_spill] sm:$0xff]  ;;  %v4027_v26 = vld [vmem:[#allocation61_spill] sm:$0xff] }
 0x109   : > { %1432 = vst [vmem:[%s3386_s14 + $0x48] sm:$0xff] %v1402_v15  ;;  %v1403_v27 = vadd.f32 %v1343_v39, %v4014_v11  ;;  %v1282_v46 = vadd.f32 %v1252_v35, %v1218_v24  ;;  %v1253_v54 = vmul.f32 %v4004_v61, %v4015_v31  ;;  %v1317_v33 = vmul.f32 %v2440_v2, %v4016_v34  ;;  %v4022_v18 = vld [vmem:[#allocation47_spill] sm:$0xff]  ;;  %v4028_v28 = vld [vmem:[#allocation65_spill] sm:$0xff]  ;;  %v4030_v20 = vld [vmem:[#allocation56_spill] sm:$0xff] }
 0x10a   : > { %v1404_v9 = vadd.f32 %v1344_v0, %v4017_v6  ;;  %v1345_v36 = vadd.f32 %v1315_v56, %v1281_v57  ;;  %v1220_v48 = vmul.f32 %v2400_v47, %v4018_v37  ;;  %v1254_v32 = vmul.f32 %v1873_v13, %v4004_v61  ;;  %v4025_v50 = vld [vmem:[#allocation55_spill] sm:$0xff]  ;;  %v4031_v0 = vld [vmem:[#allocation66_spill] sm:$0xff] }
 0x10b   : > { %1433 = vst [vmem:[%s3386_s14 + $0x50] sm:$0xff] %v1403_v27  ;;  %v1346_v16 = vadd.f32 %v1316_v12, %v1282_v46  ;;  %v1283_v49 = vadd.f32 %v1253_v54, %v1219_v59  ;;  %v1318_v62 = vmul.f32 %v2440_v2, %v4019_v5  ;;  %v1221_v53 = vmul.f32 %v2400_v47, %v4020_v43  ;;  %v4029_v39 = vld [vmem:[#allocation35_spill] sm:$0xff]  ;;  %v4034_v27 = vld [vmem:[#allocation57_spill] sm:$0xff] }
 0x10c   : > { %1434 = vst [vmem:[%s3386_s14 + $0x58] sm:$0xff] %v1404_v9  ;;  %v1405_v29 = vadd.f32 %v1345_v36, %v4021_v8  ;;  %v1284_v52 = vadd.f32 %v1254_v32, %v1220_v48  ;;  %v1255_v45 = vmul.f32 %v4004_v61, %v4022_v18  ;;  %v1319_v21 = vmul.f32 %v2440_v2, %v4023_v4  ;;  %v4032_v55 = vld [vmem:[#allocation27_spill] sm:$0xff]  ;;  %v4036_v9 = vld [vmem:[#allocation28_spill] sm:$0xff] }
 0x10d   : > { %v1406_v58 = vadd.f32 %v1346_v16, %v4024_v30  ;;  %v1347_v22 = vadd.f32 %v1317_v33, %v1283_v49  ;;  %v1222_v38 = vmul.f32 %v2400_v47, %v4025_v50  ;;  %v1256_v41 = vmul.f32 %v4004_v61, %v4026_v19  ;;  %v4033_v59 = vld [vmem:[#allocation63_spill] sm:$0xff]  ;;  %v4035_v33 = vld [vmem:[#allocation74_spill] sm:$0xff]  ;;  %v4037_v48 = vld [vmem:[#allocation64_spill] sm:$0xff] }
 0x10e   : > { %1435 = vst [vmem:[%s3386_s14 + $0x60] sm:$0xff] %v1405_v29  ;;  %v1348_v1 = vadd.f32 %v1318_v62, %v1284_v52  ;;  %v1285_v25 = vadd.f32 %v1255_v45, %v1221_v53  ;;  %v1320_v56 = vmul.f32 %v2440_v2, %v4027_v26  ;;  %v1223_v15 = vmul.f32 %v2400_v47, %v4028_v28  ;;  %v4038_v32 = vld [vmem:[#allocation75_spill] sm:$0xff]  ;;  %v4039_v49 = vld [vmem:[#allocation32_spill] sm:$0xff]  ;;  %v4046_v19 = vld [vmem:[#allocation81_spill] sm:$0xff] }
 0x10f   : > { %1436 = vst [vmem:[%s3386_s14 + $0x68] sm:$0xff] %v1406_v58  ;;  %v1407_v40 = vadd.f32 %v1347_v22, %v4029_v39  ;;  %v1286_v24 = vadd.f32 %v1256_v41, %v1222_v38  ;;  %v1257_v35 = vmul.f32 %v4004_v61, %v4030_v20  ;;  %v1321_v57 = vmul.f32 %v2440_v2, %v4031_v0  ;;  %v4040_v43 = vld [vmem:[#allocation71_spill] sm:$0xff]  ;;  %v4042_v18 = vld [vmem:[#allocation76_spill] sm:$0xff] }
 0x110   : > { %v1408_v12 = vadd.f32 %v1348_v1, %v4032_v55  ;;  %v1349_v14 = vadd.f32 %v1319_v21, %v1285_v25  ;;  %v1224_v11 = vmul.f32 %v2400_v47, %v4033_v59  ;;  %v1258_v46 = vmul.f32 %v4004_v61, %v4034_v27  ;;  %v4041_v53 = vld [vmem:[#allocation67_spill] sm:$0xff]  ;;  %v4043_v4 = vld [vmem:[#allocation80_spill] sm:$0xff]  ;;  %v4047_v1 = vld [vmem:[#allocation33_spill] sm:$0xff] }
 0x111   : > { %1437 = vst [vmem:[%s3386_s14 + $0x70] sm:$0xff] %v1407_v40  ;;  %v1350_v31 = vadd.f32 %v1320_v56, %v1286_v24  ;;  %v1287_v54 = vadd.f32 %v1257_v35, %v1223_v15  ;;  %v1322_v34 = vmul.f32 %v2440_v2, %v3963_v60  ;;  %v1225_v6 = vmul.f32 %v2400_v47, %v4035_v33  ;;  %v4044_v30 = vld [vmem:[#allocation24_spill] sm:$0xff]  ;;  %v4048_v56 = vld [vmem:[#allocation78_spill] sm:$0xff]  ;;  %v4049_v15 = vld [vmem:[#allocation73_spill] sm:$0xff] }
 0x112   : > { %1438 = vst [vmem:[%s3386_s14 + $0x78] sm:$0xff] %v1408_v12  ;;  %v1409_v36 = vadd.f32 %v1349_v14, %v4036_v9  ;;  %v1288_v37 = vadd.f32 %v1258_v46, %v1224_v11  ;;  %v1259_v13 = vmul.f32 %v4004_v61, %v4037_v48  ;;  %v1323_v16 = vmul.f32 %v2440_v2, %v4038_v32  ;;  %v4045_v50 = vld [vmem:[#allocation72_spill] sm:$0xff]  ;;  %v4051_v12 = vld [vmem:[#allocation79_spill] sm:$0xff]  ;;  %v4053_v27 = vld [vmem:[#allocation25_spill] sm:$0xff] }
 0x113   : > { %v1410_v5 = vadd.f32 %v1350_v31, %v4039_v49  ;;  %v1351_v62 = vadd.f32 %v1321_v57, %v1287_v54  ;;  %v1226_v60 = vmul.f32 %v2400_v47, %v4040_v43  ;;  %v1260_v8 = vmul.f32 %v4004_v61, %v4041_v53  ;;  %v4050_v0 = vld [vmem:[#allocation36_spill] sm:$0xff]  ;;  %v4056_v9 = vld [vmem:[#allocation93_spill] sm:$0xff]  ;;  %v4060_v43 = vld [vmem:[#allocation31_spill] sm:$0xff] }
 0x114   : > { %1439 = vst [vmem:[%s3386_s14 + $0x80] sm:$0xff] %v1409_v36  ;;  %v1352_v29 = vadd.f32 %v1322_v34, %v1288_v37  ;;  %v1289_v52 = vadd.f32 %v1259_v13, %v1225_v6  ;;  %v1324_v45 = vmul.f32 %v2440_v2, %v4042_v18  ;;  %v1227_v21 = vmul.f32 %v2400_v47, %v4043_v4  ;;  %v4052_v59 = vld [vmem:[#allocation92_spill] sm:$0xff]  ;;  %v4055_v34 = vld [vmem:[#allocation82_spill] sm:$0xff]  ;;  %v4058_v13 = vld [vmem:[#allocation37_spill] sm:$0xff] }
 0x115   : > { %1440 = vst [vmem:[%s3386_s14 + $0x88] sm:$0xff] %v1410_v5  ;;  %v1411_v58 = vadd.f32 %v1351_v62, %v4044_v30  ;;  %v1290_v22 = vadd.f32 %v1260_v8, %v1226_v60  ;;  %v1261_v38 = vmul.f32 %v4004_v61, %v4045_v50  ;;  %v1325_v41 = vmul.f32 %v2440_v2, %v4046_v19  ;;  %v4054_v54 = vld [vmem:[#allocation88_spill] sm:$0xff]  ;;  %v4059_v49 = vld [vmem:[#allocation89_spill] sm:$0xff]  ;;  %v4063_v30 = vld [vmem:[#allocation51_spill] sm:$0xff] }
 0x116   : > { %v1412_v25 = vadd.f32 %v1352_v29, %v4047_v1  ;;  %v1353_v26 = vadd.f32 %v1323_v16, %v1289_v52  ;;  %v1228_v28 = vmul.f32 %v2400_v47, %v4048_v56  ;;  %v1262_v39 = vmul.f32 %v4004_v61, %v4049_v15  ;;  %v4057_v37 = vld [vmem:[#allocation96_spill] sm:$0xff]  ;;  %v4061_v4 = vld [vmem:[#allocation101_spill] sm:$0xff]  ;;  %v4068_v1 = vld [vmem:[#allocation106_spill] sm:$0xff] }
 0x117   : > { %1441 = vst [vmem:[%s3386_s14 + $0x90] sm:$0xff] %v1411_v58  ;;  %v1354_v40 = vadd.f32 %v1324_v45, %v1290_v22  ;;  %v1291_v24 = vadd.f32 %v1261_v38, %v1227_v21  ;;  %v1326_v20 = vmul.f32 %v2440_v2, %v3984_v23  ;;  %v1229_v35 = vmul.f32 %v2400_v47, %v3983_v10  ;;  %v4062_v21 = vld [vmem:[#allocation103_spill] sm:$0xff]  ;;  %v4065_v22 = vld [vmem:[#allocation102_spill] sm:$0xff]  ;;  %v4066_v38 = vld [vmem:[#allocation104_spill] sm:$0xff] }
 0x118   : > { %1442 = vst [vmem:[%s3386_s14 + $0x98] sm:$0xff] %v1412_v25  ;;  %v1413_v57 = vadd.f32 %v1353_v26, %v4050_v0  ;;  %v1292_v55 = vadd.f32 %v1262_v39, %v1228_v28  ;;  %v1263_v14 = vmul.f32 %v4004_v61, %v4051_v12  ;;  %v1327_v11 = vmul.f32 %v2440_v2, %v4052_v59  ;;  %v4069_v26 = vld [vmem:[#allocation105_spill] sm:$0xff]  ;;  %v4070_v15 = vld [vmem:[#allocation108_spill] sm:$0xff] }
 0x119   : > { %v1414_v46 = vadd.f32 %v1354_v40, %v4053_v27  ;;  %v1355_v31 = vadd.f32 %v1325_v41, %v1291_v24  ;;  %v1230_v23 = vmul.f32 %v2400_v47, %v4054_v54  ;;  %v1264_v10 = vmul.f32 %v4004_v61, %v4055_v34 }
 0x11a   : > { %1443 = vst [vmem:[%s3386_s14 + $0xa0] sm:$0xff] %v1413_v57  ;;  %v1356_v33 = vadd.f32 %v1326_v20, %v1292_v55  ;;  %v1293_v6 = vadd.f32 %v1263_v14, %v1229_v35  ;;  %v1328_v36 = vmul.f32 %v2440_v2, %v4056_v9  ;;  %v1231_v48 = vmul.f32 %v2400_v47, %v4057_v37  ;;  %v4072_v20 = vld [vmem:[#allocation109_spill] sm:$0xff] }
 0x11b   : > { %1444 = vst [vmem:[%s3386_s14 + $0xa8] sm:$0xff] %v1414_v46  ;;  %v1415_v32 = vadd.f32 %v1355_v31, %v4058_v13  ;;  %v1294_v16 = vadd.f32 %v1264_v10, %v1230_v23  ;;  %v1265_v5 = vmul.f32 %v4004_v61, %v4059_v49  ;;  %v1329_v62 = vmul.f32 %v2440_v2, %v3996_v42 }
 0x11c   : > { %v1416_v60 = vadd.f32 %v1356_v33, %v4060_v43  ;;  %v1357_v53 = vadd.f32 %v1327_v11, %v1293_v6  ;;  %v1232_v8 = vmul.f32 %v2400_v47, %v4000_v7  ;;  %v1266_v29 = vmul.f32 %v4004_v61, %v4001_v3  ;;  %v4064_v47 = vld [vmem:[#allocation34_spill] sm:$0xff] }
 0x11d   : > { %1445 = vst [vmem:[%s3386_s14 + $0xb0] sm:$0xff] %v1415_v32  ;;  %v1358_v52 = vadd.f32 %v1328_v36, %v1294_v16  ;;  %v1295_v18 = vadd.f32 %v1265_v5, %v1231_v48  ;;  %v1330_v45 = vmul.f32 %v2440_v2, %v4003_v63  ;;  %v1267_v42 = vmul.f32 %v4004_v61, %v4061_v4  ;;  %v4067_v2 = vld [vmem:[#allocation38_spill] sm:$0xff] }
 0x11e   : > { %v1132_v58 = vadd.f32 %v4063_v30, %v4062_v21  ;;  %1446 = vst [vmem:[%s3386_s14 + $0xb8] sm:$0xff] %v1416_v60  ;;  %v1417_v7 = vadd.f32 %v1357_v53, %v4064_v47  ;;  %v1296_v3 = vadd.f32 %v1266_v29, %v1232_v8  ;;  %v1268_v50 = vmul.f32 %v4004_v61, %v4065_v22 }
 0x11f   : > { %v1133_v19 = vadd.f32 %v3358_v44, %v4066_v38  ;;  %v1418_v63 = vadd.f32 %v1358_v52, %v4067_v2  ;;  %v1359_v41 = vadd.f32 %v1329_v62, %v1295_v18  ;;  %v1297_v25 = vadd.f32 %v1267_v42, %v4068_v1  ;;  %v4071_v44 = vld [vmem:[#allocation107_spill] sm:$0xff] }
 0x120   : > { %v1134_v56 = vadd.f32 %v3364_v17, %v4069_v26  ;;  %1447 = vst [vmem:[%s3386_s14 + $0xc0] sm:$0xff] %v1417_v7  ;;  %v1360_v28 = vadd.f32 %v1330_v45, %v1296_v3  ;;  %v1298_v39 = vadd.f32 %v1268_v50, %v4070_v15 }
 0x121   : > { %1448 = vst [vmem:[%s3386_s14 + $0xc8] sm:$0xff] %v1418_v63  ;;  %v1419_v61 = vadd.f32 %v1359_v41, %v3352_v51  ;;  %v1361_v40 = vadd.f32 %v4071_v44, %v1297_v25 }
 0x122   : > { %v1420_v24 = vadd.f32 %v1360_v28, %v1132_v58  ;;  %v1362_v35 = vadd.f32 %v4072_v20, %v1298_v39 }
 0x123   : > { %1449 = vst [vmem:[%s3386_s14 + $0xd0] sm:$0xff] %v1419_v61  ;;  %v1421_v17 = vadd.f32 %v1361_v40, %v1133_v19 }
 0x124   : > { %1450 = vst [vmem:[%s3386_s14 + $0xd8] sm:$0xff] %v1420_v24  ;;  %v1422_v0 = vadd.f32 %v1362_v35, %v1134_v56 }
 0x125   : > { %1451 = vst [vmem:[%s3386_s14 + $0xe0] sm:$0xff] %v1421_v17 }
 0x126   : > { %1452 = vst [vmem:[%s3386_s14 + $0xe8] sm:$0xff] %v1422_v0 }
 0x127   : > { %1997 = shalt.err (!%p1994_p0)
}
 0x128   : > { %s1998_s27 = scalar_lea.hbm %s3609_s30, 4096  ;;  %s2002_s28 = scalar_lea.hbm %s3667_s5, 8192 }
 0x129   : > { %p1999_p3 = scmp.ne.s32.totalorder %s3609_s30, %s1998_s27  ;;  %p2003_p12 = scmp.lt.s32.totalorder %s3609_s30, %s3667_s5 }
 0x12a   : > { %p2004_p4 = scmp.lt.s32.totalorder %s2002_s28, %s1998_s27 }
 0x12b   : > { %p2000_p8 = pnand %p1999_p3, %p4073_p5 }
 0x12c   : > { %p2005_p6 = por %p2004_p4, %p2003_p12 }
 0x12d   : > { %p2001_p13 = pneg %p2000_p8 }
 0x12f   : > { %p2006_p7 = pnand %p2005_p6, %p2001_p13 }
 0x131   : > { %2009 = shalt.err (!%p2006_p7)
}
 0x132   : > { %s2083_s8 = smov 128   ;;  %s2084_s9 = smov 8  }
 0x133   : > { %1780 = dma.vmem_to_hbm [thread:$0]  (%p4073_p5), %s3611_s16, 4096, %s3609_s30, %s1489_s21, %s2083_s8, %s2083_s8, %s2084_s9  }
 0x134 PF: > { %s1521_s7 = sand.u32 1, %s2052_s18   ;;  %p4074_p10 = scmp.ne.s32.totalorder %s3804_s12, 0 }
 0x135   : > { %p4075_p2 = scmp.ge.s32.totalorder %s2072_s23, 2  ;;  %s1522_s14 = scalar_lea.sflag [#allocation4], %s1521_s7 }
 0x137   : > { %p1797_p9 = pnand %p4075_p2, %p4074_p10 }
 0x139   : > { %p1798_p11 = pneg %p1797_p9 }
 0x13b   : > { %2047 = dma.done.wait (%p1798_p11), %s1522_s14, 4096  }
 0x13c   : > { %2049 = vsyncadd (%p1798_p11), %s1522_s14, 4294963200  ;;  %s25_s23 = sadd.s32 1, %s2072_s23   ;;  %s4076_s26 = sld [smem:[#allocation15_spill]] }
 0x13d   : > { %p22_p1 = scmp.ge.s32.totalorder %s25_s23, 4   ;;  %s4077_s20 = sld [smem:[#allocation18_spill]] }
 0x13e   : > { %s4078_s21 = sld [smem:[#allocation16_spill]]  ;;  %s4080_s18 = smov %s2056_s19 }
 0x13f   : > { %s4079_s22 = sld [smem:[#allocation17_spill]]  ;;  %24 = sbr.rel (!%p22_p1) target bundleno = 11 (0xb), region = 127 }
 0x142   : > { %s4081_s19 = smov %s4076_s26 }
 0x144   :  { %1527 = vsyncpa [#allocation3], 1 }
 0x145   :  { %1529 = vsyncpa [#allocation3 + $0x1], 1 }
 0x146   :  { %1530 = vsyncpa [#allocation6], 1 }
 0x147   :  { %1532 = vsyncpa [#allocation6 + $0x1], 1 }
 0x148   :  { %1533 = vsyncpa [#allocation9], 1 }
 0x149   :  { %1534 = vsyncpa [#allocation4], 1 }
 0x14a   :  { %1536 = vsyncpa [#allocation4 + $0x1], 1 }

</bundles_post_ra>
